<compile_context>
chip_gen: v5e
topology: v5e:2x2
jax: 0.10.0
libtpu: 0.0.40
codegen_flags: <defaults>
</compile_context>

<pallas_src>
import jax
import jax.numpy as jnp
import numpy as np
from jax.experimental import pallas as pl
from jax.experimental.pallas import tpu as pltpu


def _head_kernel(x_ref, w_ref, b_ref, o_ref):
    # x_ref: (bB, HW, C)  feature block (relu not yet applied), bf16 or f32
    # w_ref: (C, NCp)     f32 classifier weight^T, pre-scaled by 1/HW, zero-padded to 128 lanes
    # b_ref: (1, NCp)     f32 bias, zero-padded
    # o_ref: (bB, NCp)    f32 logits (padded columns are zero)
    x = x_ref[...].astype(jnp.float32)      # upcast before VPU work (v5e has no bf16 VALU)
    x = jnp.maximum(x, 0.0)                 # F.relu
    pooled = jnp.sum(x, axis=1)             # (bB, C): sublane-axis reduce (cheap vreg adds)
    y = jnp.dot(pooled, w_ref[...], preferred_element_type=jnp.float32)
    o_ref[...] = y + b_ref[...]             # pooling scale already folded into w


def finetune_dense_head(feat_nhwc, weight, bias):
    """relu -> avg_pool2d(7) -> flatten -> Linear(1920, num_classes).

    feat_nhwc: [B, 7, 7, 1920] backbone output (NHWC), any float dtype (bf16 preferred).
    weight:    [num_classes, 1920]  (PyTorch nn.Linear layout).
    bias:      [num_classes].
    Returns:   [B, num_classes] f32 logits.
    """
    B, H, W, C = feat_nhwc.shape
    assert H == 7 and W == 7, "avg_pool2d(kernel_size=7) expects a 7x7 feature map"
    HW = H * W
    NC = weight.shape[0]
    # Lane-dense output: pad classes to a multiple of 128 (for NC >= 128 on v6e/v7x a
    # multiple of 256 would keep the 2x256x256 MXU fully fed; 128 is right for NC=10).
    NCp = max(128, ((NC + 127) // 128) * 128)

    # Fold the 1/49 pooling scale into the small, VMEM-resident weight (kept in f32).
    w_t = weight.T.astype(jnp.float32) * (1.0 / HW)                      # (C, NC)
    w_p = jnp.zeros((C, NCp), jnp.float32).at[:, :NC].set(w_t)           # (C, NCp)
    b_p = jnp.zeros((1, NCp), jnp.float32).at[:, :NC].set(
        bias.astype(jnp.float32))                                        # (1, NCp)

    x = feat_nhwc.reshape(B, HW, C)         # free reshape (NHWC is contiguous)

    # Batch tile: keep 2 double-buffered x blocks comfortably inside v7x's scoped VMEM.
    max_bb = 32 if x.dtype.itemsize <= 2 else 16
    bB = min(B, max_bb)
    grid = (pl.cdiv(B, bB),)                # ragged tail handled by masked edge blocks

    cost = pl.CostEstimate(
        flops=2 * B * HW * C + 2 * B * C * NCp,
        bytes_accessed=x.size * x.dtype.itemsize
        + w_p.size * 4 + b_p.size * 4 + B * NCp * 4,
        transcendentals=0,
    )

    out = pl.pallas_call(
        _head_kernel,
        out_shape=jax.ShapeDtypeStruct((B, NCp), jnp.float32),
        grid=grid,
        in_specs=[
            pl.BlockSpec((bB, HW, C), lambda i: (i, 0, 0)),   # pipelined over batch
            pl.BlockSpec((C, NCp), lambda i: (0, 0)),         # resident weight
            pl.BlockSpec((1, NCp), lambda i: (0, 0)),         # resident bias
        ],
        out_specs=pl.BlockSpec((bB, NCp), lambda i: (i, 0)),
        compiler_params=pltpu.CompilerParams(
            dimension_semantics=("parallel",),                # megacore-shard the batch
            vmem_limit_bytes=32 * 1024 * 1024,
        ),
        cost_estimate=cost,
    )(x, w_p, b_p)

    return out[:, :NC]


if __name__ == "__main__":
    B, H, W, C = 2, 7, 7, 1920
    num_classes = 10

    key = jax.random.PRNGKey(0)
    k_feat, k_w, k_b = jax.random.split(key, 3)

    # Backbone output in NHWC / bf16 (what a JAX DenseNet backbone would emit).
    feat = jax.random.normal(k_feat, (B, H, W, C), dtype=jnp.float32).astype(jnp.bfloat16)
    # Deterministic init for the classifier nn.Linear(1920, num_classes).
    weight = jax.random.normal(k_w, (num_classes, C), dtype=jnp.float32) * 0.02
    bias = jax.random.normal(k_b, (num_classes,), dtype=jnp.float32) * 0.01

    out = jax.block_until_ready(finetune_dense_head(feat, weight, bias))

    # Pure-JAX reference of the head (same bf16 features, f32 math).
    f = jnp.maximum(feat.astype(jnp.float32), 0.0)
    pooled = jnp.mean(f, axis=(1, 2))
    ref = jax.block_until_ready(pooled @ weight.T + bias)

    assert out.shape == (B, num_classes)
    assert np.allclose(np.asarray(out), np.asarray(ref), rtol=1e-3, atol=1e-3)

    print("KERNEL_OK")
</pallas_src>

<mosaic_0001>
module attributes {stable_mosaic.version = 11 : i64} {
  func.func @_head_kernel(%arg0: i32, %arg1: memref<2x49x1920xbf16, #tpu.memory_space<vmem>>, %arg2: memref<1920x128xf32, #tpu.memory_space<vmem>>, %arg3: memref<1x128xf32, #tpu.memory_space<vmem>>, %arg4: memref<2x128xf32, #tpu.memory_space<vmem>>) attributes {dimension_semantics = [#tpu.dimension_semantics<parallel>], iteration_bounds = array<i64: 1>, scalar_prefetch = 0 : i64, scratch_operands = 0 : i64, tpu.core_type = #tpu.core_type<tc>, window_params = [{transform_indices = @transform_0, window_bounds = array<i64: 2, 49, 1920>}, {pipeline_mode = #tpu.pipeline_mode<synchronous>, transform_indices = @transform_1, window_bounds = array<i64: 1920, 128>}, {pipeline_mode = #tpu.pipeline_mode<synchronous>, transform_indices = @transform_2, window_bounds = array<i64: 1, 128>}, {transform_indices = @transform_3, window_bounds = array<i64: 2, 128>}]} {
    %c0 = arith.constant 0 : index
    %c0_0 = arith.constant 0 : index
    %c0_1 = arith.constant 0 : index
    %0 = vector.load %arg1[%c0, %c0_0, %c0_1] : memref<2x49x1920xbf16, #tpu.memory_space<vmem>>, vector<2x49x1920xbf16>
    %1 = arith.extf %0 : vector<2x49x1920xbf16> to vector<2x49x1920xf32>
    %cst = arith.constant 0.000000e+00 : f32
    %2 = vector.broadcast %cst : f32 to vector<2x49x1920xf32>
    %3 = arith.maximumf %1, %2 : vector<2x49x1920xf32>
    %cst_2 = arith.constant dense<0.000000e+00> : vector<2x1920xf32>
    %4 = vector.multi_reduction <add>, %3, %cst_2 [1] : vector<2x49x1920xf32> to vector<2x1920xf32>
    %c0_3 = arith.constant 0 : index
    %c0_4 = arith.constant 0 : index
    %5 = vector.load %arg2[%c0_3, %c0_4] : memref<1920x128xf32, #tpu.memory_space<vmem>>, vector<1920x128xf32>
    %cst_5 = arith.constant dense<0.000000e+00> : vector<2x128xf32>
    %6 = tpu.matmul %4, %5, %cst_5 {dimension_numbers = #tpu.dot_dimension_numbers<[1], [0], [0], [1], [0, 0, 1, 1], [], []>} : vector<2x1920xf32>, vector<1920x128xf32>, vector<2x128xf32> -> vector<2x128xf32>
    %c0_6 = arith.constant 0 : index
    %c0_7 = arith.constant 0 : index
    %7 = vector.load %arg3[%c0_6, %c0_7] : memref<1x128xf32, #tpu.memory_space<vmem>>, vector<1x128xf32>
    %8 = vector.broadcast %7 : vector<1x128xf32> to vector<2x128xf32>
    %9 = arith.addf %6, %8 : vector<2x128xf32>
    %c0_8 = arith.constant 0 : index
    %c0_9 = arith.constant 0 : index
    %10 = vector.load %arg4[%c0_8, %c0_9] : memref<2x128xf32, #tpu.memory_space<vmem>>, vector<2x128xf32>
    tpu.vector_store %arg4[%c0_8, %c0_9], %9 {strides = array<i32>} : memref<2x128xf32, #tpu.memory_space<vmem>>, vector<2x128xf32>,
    return
  }
  func.func @transform_0(%arg0: i32) -> (i32, i32, i32) {
    %c0_i32 = arith.constant 0 : i32
    %c0_i32_0 = arith.constant 0 : i32
    %c0_i32_1 = arith.constant 0 : i32
    return %arg0, %c0_i32, %c0_i32_0 : i32, i32, i32
  }
  func.func @transform_1(%arg0: i32) -> (i32, i32) {
    %c0_i32 = arith.constant 0 : i32
    %c0_i32_0 = arith.constant 0 : i32
    %c0_i32_1 = arith.constant 0 : i32
    return %c0_i32, %c0_i32_0 : i32, i32
  }
  func.func @transform_2(%arg0: i32) -> (i32, i32) {
    %c0_i32 = arith.constant 0 : i32
    %c0_i32_0 = arith.constant 0 : i32
    %c0_i32_1 = arith.constant 0 : i32
    return %c0_i32, %c0_i32_0 : i32, i32
  }
  func.func @transform_3(%arg0: i32) -> (i32, i32) {
    %c0_i32 = arith.constant 0 : i32
    %c0_i32_0 = arith.constant 0 : i32
    return %arg0, %c0_i32 : i32, i32
  }
}

</mosaic_0001>

<bundles_post_ra>
// kernel: tpu_custom_call.1
= control target key start
LH: loop header
LB: loop body
LE: loop exit
PB: predicated region body
PF: predicated region fallthrough
CT: control target
= control target key end

     0   :  { %8 = vsyncpa [#allocation3], 0  ;;  %s2451_s0 = inlined_call_operand.vmem [shape: bf16[2,49,1920], index: 0, kind: input, shape index: {}]   ;;  %s2452_s1 = inlined_call_operand.hbm [shape: f32[1920,128], index: 1, kind: input, shape index: {}]   ;;  %s2453_s2 = inlined_call_operand.vmem [shape: f32[1,128], index: 2, kind: input, shape index: {}]   ;;  %s2454_s3 = inlined_call_operand.hbm [shape: f32[2,128], index: 3, kind: output, shape index: {}]  }
   0x1   :  { %9 = vsyncpa [#allocation4], 0  ;;  %s16_s14 = sshll.u32 %s2452_s1, 4  ;;  %s1634_s15 = smov [#allocation2]   ;;  %s17_s14 = int_to_ptr.hbm [resolvable:$true] %s16_s14 }
   0x2   :  { %s18_s16 = sshll.u32 %s1634_s15, 4  ;;  %s1635_s17 = smov 128   ;;  %s19_s16 = int_to_ptr.vmem [resolvable:$true] %s18_s16 }
   0x3   :  { %s1636_s18 = smov 8  }
   0x4   :  { %24 = dma.hbm_to_vmem [thread:$0]  %s17_s14, 30720, %s19_s16, [#allocation3], %s1635_s17, %s1635_s17, %s1636_s18  }
   0x5   :  { %1630 = dma.done.wait [#allocation3], 30720  }
   0x6   :  { %1631 = vsyncadd [#allocation3], 4294936576  ;;  %v969_v0 = vld [vmem:[#allocation2 + $0x78] sm:$0xff]  ;;  %v968_v2 = vld [vmem:[#allocation2 + $0x70] sm:$0xff]  ;;  %vm568_vm0 = vcmask 1040384   ;;  %vm1228_vm1 = vcmask 1041409  }
   0x7   :  { %v1001_v1 = vld [vmem:[#allocation2 + $0x178] sm:$0xff]  ;;  %1259 = vmatpush.msra.mxu0 %v969_v0  ;;  %v1000_v4 = vld [vmem:[#allocation2 + $0x170] sm:$0xff]  ;;  %v967_v6 = vld [vmem:[#allocation2 + $0x68] sm:$0xff]  ;;  %s1567_s22 = sshll.u32 %s2454_s3, 4  ;;  %s1568_s22 = int_to_ptr.hbm [resolvable:$true] %s1567_s22 }
   0x8   :  { %1299 = vmatpush.msra.mxu2 %v1001_v1  ;;  %v985_v3 = vld [vmem:[#allocation2 + $0xf8] sm:$0xff]  ;;  %v984_v7 = vld [vmem:[#allocation2 + $0xf0] sm:$0xff]  ;;  %v999_v8 = vld [vmem:[#allocation2 + $0x168] sm:$0xff] }
   0x9   :  { %v1017_v5 = vld [vmem:[#allocation2 + $0x1f8] sm:$0xff]  ;;  %1279 = vmatpush.msra.mxu1 %v985_v3  ;;  %1260 = vmatpush.msra.mxu0 %v968_v2  ;;  %v1016_v9 = vld [vmem:[#allocation2 + $0x1f0] sm:$0xff]  ;;  %v983_v10 = vld [vmem:[#allocation2 + $0xe8] sm:$0xff] }
   0xa   :  { %1319 = vmatpush.msra.mxu3 %v1017_v5  ;;  %1300 = vmatpush.msra.mxu2 %v1000_v4  ;;  %v966_v11 = vld [vmem:[#allocation2 + $0x60] sm:$0xff]  ;;  %v1015_v13 = vld [vmem:[#allocation2 + $0x1e8] sm:$0xff]  ;;  %v965_v16 = vld [vmem:[#allocation2 + $0x58] sm:$0xff] }
   0xb   :  { %1280 = vmatpush.msra.mxu1 %v984_v7  ;;  %v998_v12 = vld [vmem:[#allocation2 + $0x160] sm:$0xff]  ;;  %1261 = vmatpush.msra.mxu0 %v967_v6  ;;  %v997_v17 = vld [vmem:[#allocation2 + $0x158] sm:$0xff]  ;;  %v964_v20 = vld [vmem:[#allocation2 + $0x50] sm:$0xff] }
   0xc   :  { %1320 = vmatpush.msra.mxu3 %v1016_v9  ;;  %1301 = vmatpush.msra.mxu2 %v999_v8  ;;  %v982_v14 = vld [vmem:[#allocation2 + $0xe0] sm:$0xff]  ;;  %v981_v18 = vld [vmem:[#allocation2 + $0xd8] sm:$0xff]  ;;  %v996_v21 = vld [vmem:[#allocation2 + $0x150] sm:$0xff] }
   0xd   :  { %v1014_v15 = vld [vmem:[#allocation2 + $0x1e0] sm:$0xff]  ;;  %1281 = vmatpush.msra.mxu1 %v983_v10  ;;  %1262 = vmatpush.msra.mxu0 %v966_v11  ;;  %v1013_v19 = vld [vmem:[#allocation2 + $0x1d8] sm:$0xff]  ;;  %v980_v22 = vld [vmem:[#allocation2 + $0xd0] sm:$0xff] }
   0xe   :  { %1321 = vmatpush.msra.mxu3 %v1015_v13  ;;  %1302 = vmatpush.msra.mxu2 %v998_v12  ;;  %v1012_v23 = vld [vmem:[#allocation2 + $0x1d0] sm:$0xff]  ;;  %v963_v24 = vld [vmem:[#allocation2 + $0x48] sm:$0xff]  ;;  %v962_v28 = vld [vmem:[#allocation2 + $0x40] sm:$0xff] }
   0xf   :  { %1282 = vmatpush.msra.mxu1 %v982_v14  ;;  %1263 = vmatpush.msra.mxu0 %v965_v16  ;;  %v995_v25 = vld [vmem:[#allocation2 + $0x148] sm:$0xff]  ;;  %v994_v29 = vld [vmem:[#allocation2 + $0x140] sm:$0xff]  ;;  %v961_v32 = vld [vmem:[#allocation2 + $0x38] sm:$0xff] }
  0x10   :  { %1322 = vmatpush.msra.mxu3 %v1014_v15  ;;  %1303 = vmatpush.msra.mxu2 %v997_v17  ;;  %v979_v26 = vld [vmem:[#allocation2 + $0xc8] sm:$0xff]  ;;  %v978_v30 = vld [vmem:[#allocation2 + $0xc0] sm:$0xff]  ;;  %v993_v33 = vld [vmem:[#allocation2 + $0x138] sm:$0xff] }
  0x11   :  { %1283 = vmatpush.msra.mxu1 %v981_v18  ;;  %1264 = vmatpush.msra.mxu0 %v964_v20  ;;  %v1011_v27 = vld [vmem:[#allocation2 + $0x1c8] sm:$0xff]  ;;  %v1010_v31 = vld [vmem:[#allocation2 + $0x1c0] sm:$0xff]  ;;  %v977_v34 = vld [vmem:[#allocation2 + $0xb8] sm:$0xff] }
  0x12   :  { %1323 = vmatpush.msra.mxu3 %v1013_v19  ;;  %1304 = vmatpush.msra.mxu2 %v996_v21  ;;  %v1009_v35 = vld [vmem:[#allocation2 + $0x1b8] sm:$0xff]  ;;  %v960_v36 = vld [vmem:[#allocation2 + $0x30] sm:$0xff]  ;;  %v959_v40 = vld [vmem:[#allocation2 + $0x28] sm:$0xff] }
  0x13   :  { %1284 = vmatpush.msra.mxu1 %v980_v22  ;;  %1265 = vmatpush.msra.mxu0 %v963_v24  ;;  %v992_v37 = vld [vmem:[#allocation2 + $0x130] sm:$0xff]  ;;  %v991_v41 = vld [vmem:[#allocation2 + $0x128] sm:$0xff]  ;;  %v958_v44 = vld [vmem:[#allocation2 + $0x20] sm:$0xff] }
  0x14   :  { %1324 = vmatpush.msra.mxu3 %v1012_v23  ;;  %1305 = vmatpush.msra.mxu2 %v995_v25  ;;  %v976_v38 = vld [vmem:[#allocation2 + $0xb0] sm:$0xff]  ;;  %v975_v42 = vld [vmem:[#allocation2 + $0xa8] sm:$0xff]  ;;  %v990_v45 = vld [vmem:[#allocation2 + $0x120] sm:$0xff] }
  0x15   :  { %1285 = vmatpush.msra.mxu1 %v979_v26  ;;  %1266 = vmatpush.msra.mxu0 %v962_v28  ;;  %v1008_v39 = vld [vmem:[#allocation2 + $0x1b0] sm:$0xff]  ;;  %v1007_v43 = vld [vmem:[#allocation2 + $0x1a8] sm:$0xff]  ;;  %v974_v46 = vld [vmem:[#allocation2 + $0xa0] sm:$0xff] }
  0x16   :  { %1325 = vmatpush.msra.mxu3 %v1011_v27  ;;  %1306 = vmatpush.msra.mxu2 %v994_v29  ;;  %v1006_v47 = vld [vmem:[#allocation2 + $0x1a0] sm:$0xff]  ;;  %v957_v48 = vld [vmem:[#allocation2 + $0x18] sm:$0xff]  ;;  %v956_v52 = vld [vmem:[#allocation2 + $0x10] sm:$0xff] }
  0x17   :  { %1286 = vmatpush.msra.mxu1 %v978_v30  ;;  %1267 = vmatpush.msra.mxu0 %v961_v32  ;;  %v989_v49 = vld [vmem:[#allocation2 + $0x118] sm:$0xff]  ;;  %v988_v53 = vld [vmem:[#allocation2 + $0x110] sm:$0xff]  ;;  %v955_v56 = vld [vmem:[#allocation2 + $0x8] sm:$0xff] }
  0x18   :  { %1326 = vmatpush.msra.mxu3 %v1010_v31  ;;  %1307 = vmatpush.msra.mxu2 %v993_v33  ;;  %v973_v50 = vld [vmem:[#allocation2 + $0x98] sm:$0xff]  ;;  %v972_v54 = vld [vmem:[#allocation2 + $0x90] sm:$0xff]  ;;  %v987_v57 = vld [vmem:[#allocation2 + $0x108] sm:$0xff] }
  0x19   :  { %1287 = vmatpush.msra.mxu1 %v977_v34  ;;  %1268 = vmatpush.msra.mxu0 %v960_v36  ;;  %v1005_v51 = vld [vmem:[#allocation2 + $0x198] sm:$0xff]  ;;  %v1004_v55 = vld [vmem:[#allocation2 + $0x190] sm:$0xff]  ;;  %v971_v58 = vld [vmem:[#allocation2 + $0x88] sm:$0xff] }
  0x1a   :  { %1327 = vmatpush.msra.mxu3 %v1009_v35  ;;  %1308 = vmatpush.msra.mxu2 %v992_v37  ;;  %v1003_v59 = vld [vmem:[#allocation2 + $0x188] sm:$0xff]  ;;  %v954_v60 = vld [vmem:[#allocation2] sm:$0xff]  ;;  %v1033_v62 = vld [vmem:[#allocation2 + $0x278] sm:$0xff] }
  0x1b   :  { %1288 = vmatpush.msra.mxu1 %v976_v38  ;;  %1269 = vmatpush.msra.mxu0 %v959_v40  ;;  %v986_v61 = vld [vmem:[#allocation2 + $0x100] sm:$0xff]  ;;  %v1065_v63 = vld [vmem:[#allocation2 + $0x378] sm:$0xff]  ;;  %v1032_v2 = vld [vmem:[#allocation2 + $0x270] sm:$0xff] }
  0x1c   :  { %1328 = vmatpush.msra.mxu3 %v1008_v39  ;;  %1309 = vmatpush.msra.mxu2 %v991_v41  ;;  %v970_v0 = vld [vmem:[#allocation2 + $0x80] sm:$0xff]  ;;  %v1049_v3 = vld [vmem:[#allocation2 + $0x2f8] sm:$0xff]  ;;  %v1064_v4 = vld [vmem:[#allocation2 + $0x370] sm:$0xff] }
  0x1d   :  { %1289 = vmatpush.msra.mxu1 %v975_v42  ;;  %1270 = vmatpush.msra.mxu0 %v958_v44  ;;  %v1002_v1 = vld [vmem:[#allocation2 + $0x180] sm:$0xff]  ;;  %v1081_v5 = vld [vmem:[#allocation2 + $0x3f8] sm:$0xff]  ;;  %v1031_v6 = vld [vmem:[#allocation2 + $0x268] sm:$0xff] }
  0x1e   :  { %1329 = vmatpush.msra.mxu3 %v1007_v43  ;;  %1310 = vmatpush.msra.mxu2 %v990_v45  ;;  %v1048_v7 = vld [vmem:[#allocation2 + $0x2f0] sm:$0xff]  ;;  %v1063_v8 = vld [vmem:[#allocation2 + $0x368] sm:$0xff]  ;;  %v1030_v10 = vld [vmem:[#allocation2 + $0x260] sm:$0xff] }
  0x1f   :  { %1290 = vmatpush.msra.mxu1 %v974_v46  ;;  %1271 = vmatpush.msra.mxu0 %v957_v48  ;;  %v1080_v9 = vld [vmem:[#allocation2 + $0x3f0] sm:$0xff]  ;;  %v1047_v11 = vld [vmem:[#allocation2 + $0x2e8] sm:$0xff]  ;;  %v1062_v12 = vld [vmem:[#allocation2 + $0x360] sm:$0xff] }
  0x20   :  { %1330 = vmatpush.msra.mxu3 %v1006_v47  ;;  %1311 = vmatpush.msra.mxu2 %v989_v49  ;;  %v1079_v13 = vld [vmem:[#allocation2 + $0x3e8] sm:$0xff]  ;;  %v1029_v14 = vld [vmem:[#allocation2 + $0x258] sm:$0xff]  ;;  %v1046_v15 = vld [vmem:[#allocation2 + $0x2e0] sm:$0xff] }
  0x21   :  { %1291 = vmatpush.msra.mxu1 %v973_v50  ;;  %1272 = vmatpush.msra.mxu0 %v956_v52  ;;  %v1061_v16 = vld [vmem:[#allocation2 + $0x358] sm:$0xff]  ;;  %v1078_v17 = vld [vmem:[#allocation2 + $0x3e0] sm:$0xff]  ;;  %v1028_v18 = vld [vmem:[#allocation2 + $0x250] sm:$0xff] }
  0x22   :  { %1331 = vmatpush.msra.mxu3 %v1005_v51  ;;  %1312 = vmatpush.msra.mxu2 %v988_v53  ;;  %v1045_v19 = vld [vmem:[#allocation2 + $0x2d8] sm:$0xff]  ;;  %v1060_v20 = vld [vmem:[#allocation2 + $0x350] sm:$0xff]  ;;  %v1027_v22 = vld [vmem:[#allocation2 + $0x248] sm:$0xff] }
  0x23   :  { %1292 = vmatpush.msra.mxu1 %v972_v54  ;;  %1273 = vmatpush.msra.mxu0 %v955_v56  ;;  %v1077_v21 = vld [vmem:[#allocation2 + $0x3d8] sm:$0xff]  ;;  %v1044_v23 = vld [vmem:[#allocation2 + $0x2d0] sm:$0xff]  ;;  %v1059_v24 = vld [vmem:[#allocation2 + $0x348] sm:$0xff] }
  0x24   :  { %1332 = vmatpush.msra.mxu3 %v1004_v55  ;;  %1313 = vmatpush.msra.mxu2 %v987_v57  ;;  %v1076_v25 = vld [vmem:[#allocation2 + $0x3d0] sm:$0xff]  ;;  %v1026_v26 = vld [vmem:[#allocation2 + $0x240] sm:$0xff]  ;;  %v1043_v27 = vld [vmem:[#allocation2 + $0x2c8] sm:$0xff] }
  0x25   :  { %1293 = vmatpush.msra.mxu1 %v971_v58  ;;  %1274 = vmatpush.msra.mxu0 %v954_v60  ;;  %v1058_v28 = vld [vmem:[#allocation2 + $0x340] sm:$0xff]  ;;  %v1075_v29 = vld [vmem:[#allocation2 + $0x3c8] sm:$0xff]  ;;  %v1674_v32 = vld [vmem:[%s2451_s0 + $0x78] sm:$0xff] }
  0x26   :  { %1333 = vmatpush.msra.mxu3 %v1003_v59  ;;  %1314 = vmatpush.msra.mxu2 %v986_v61  ;;  %v1664_v30 = vld [vmem:[%s2451_s0] sm:$0xff]  ;;  %v1025_v33 = vld [vmem:[#allocation2 + $0x238] sm:$0xff]  ;;  %v1684_v36 = vld [vmem:[%s2451_s0 + $0xf0] sm:$0xff]  ;;  %v173_v45 = vunpack.c.l.bf16 %v1674_v32 }
  0x27   :  { %1339 = vmatpush.msrb.mxu0 %v1033_v62  ;;  %1294 = vmatpush.msra.mxu1 %v970_v0  ;;  %v1669_v31 = vld [vmem:[%s2451_s0 + $0x3c] sm:$0xff]  ;;  %v1679_v35 = vld [vmem:[%s2451_s0 + $0xb4] sm:$0xff]  ;;  %v1689_v37 = vld [vmem:[%s2451_s0 + $0x12c] sm:$0xff]  ;;  %v143_v38 = vunpack.c.l.bf16 %v1664_v30  ;;  %v203_v57 = vunpack.c.l.bf16 %v1684_v36 }
  0x28   :  { %1379 = vmatpush.msrb.mxu2 %v1065_v63  ;;  %1334 = vmatpush.msra.mxu3 %v1002_v1  ;;  %v1042_v34 = vld [vmem:[#allocation2 + $0x2c0] sm:$0xff]  ;;  %v158_v39 = vunpack.c.l.bf16 %v1669_v31  ;;  %v1057_v40 = vld [vmem:[#allocation2 + $0x338] sm:$0xff]  ;;  %v1696_v42 = vld [vmem:[%s2451_s0 + $0x168] sm:$0x11]  ;;  %v188_v50 = vunpack.c.l.bf16 %v1679_v35  ;;  %v218_v0 = vunpack.c.l.bf16 %v1689_v37 }
  0x29   :  { %1340 = vmatpush.msrb.mxu0 %v1032_v2  ;;  %1359 = vmatpush.msrb.mxu1 %v1049_v3  ;;  %v1074_v41 = vld [vmem:[#allocation2 + $0x3c0] sm:$0xff]  ;;  %v1024_v46 = vld [vmem:[#allocation2 + $0x230] sm:$0xff]  ;;  %v1717_v48 = vld [vmem:[%s2451_s0 + $0x258] sm:$0xff]  ;;  %v233_v51 = vunpack.c.l.bf16 %v1696_v42  ;;  %v353_v59 = vmax.f32 %v143_v38, 0.0 }
  0x2a   :  { %1380 = vmatpush.msrb.mxu2 %v1064_v4  ;;  %1399 = vmatpush.msrb.mxu3 %v1081_v5  ;;  %v1701_v43 = vld [vmem:[%s2451_s0 + $0x1a4] sm:$0xff]  ;;  %v1712_v47 = vld [vmem:[%s2451_s0 + $0x21c] sm:$0xff]  ;;  %v1722_v49 = vld [vmem:[%s2451_s0 + $0x294] sm:$0xff]  ;;  %v368_v60 = vmax.f32 %v158_v39, 0.0  ;;  %v293_v1 = vunpack.c.l.bf16 %v1717_v48 }
  0x2b   :  { %1341 = vmatpush.msrb.mxu0 %v1031_v6  ;;  %1360 = vmatpush.msrb.mxu1 %v1048_v7  ;;  %v1706_v44 = vld [vmem:[%s2451_s0 + $0x1e0] sm:$0xff]  ;;  %v248_v52 = vunpack.c.l.bf16 %v1701_v43  ;;  %v1041_v54 = vld [vmem:[#allocation2 + $0x2b8] sm:$0xff]  ;;  %v1731_v55 = vld [vmem:[%s2451_s0 + $0x2d0] sm:$0xff]  ;;  %v278_v58 = vunpack.c.l.bf16 %v1712_v47  ;;  %v308_v2 = vunpack.c.l.bf16 %v1722_v49 }
  0x2c   :  { %1381 = vmatpush.msrb.mxu2 %v1063_v8  ;;  %1400 = vmatpush.msrb.mxu3 %v1080_v9  ;;  %v263_v53 = vunpack.c.l.bf16 %v1706_v44  ;;  %v1736_v56 = vld [vmem:[%s2451_s0 + $0x30c] sm:$0x11]  ;;  %v1073_v62 = vld [vmem:[#allocation2 + $0x3b8] sm:$0xff]  ;;  %v323_v7 = vunpack.c.l.bf16 %v1731_v55  ;;  %v383_v8 = vmax.f32 %v173_v45, 0.0 }
  0x2d   :  { %1342 = vmatpush.msrb.mxu0 %v1030_v10  ;;  %1361 = vmatpush.msrb.mxu1 %v1047_v11  ;;  %v1056_v61 = vld [vmem:[#allocation2 + $0x330] sm:$0xff]  ;;  %v1023_v63 = vld [vmem:[#allocation2 + $0x228] sm:$0xff]  ;;  %v338_v3 = vunpack.c.l.bf16 %v1736_v56  ;;  %v458_v9 = vmax.f32 %v248_v52, 0.0  ;;  %v1022_v11 = vld [vmem:[#allocation2 + $0x220] sm:$0xff] }
  0x2e   :  { %1382 = vmatpush.msrb.mxu2 %v1062_v12  ;;  %1401 = vmatpush.msrb.mxu3 %v1079_v13  ;;  %v1040_v4 = vld [vmem:[#allocation2 + $0x2b0] sm:$0xff]  ;;  %v1055_v5 = vld [vmem:[#allocation2 + $0x328] sm:$0xff]  ;;  %v443_v13 = vmax.f32 %v233_v51, 0.0  ;;  %v1770_v39 = vld [vmem:[%s2451_s0 + $0xf8] sm:$0xff]  ;;  %v533_v45 = vmax.f32 %v323_v7, 0.0 }
  0x2f   :  { %1343 = vmatpush.msrb.mxu0 %v1029_v14  ;;  %1362 = vmatpush.msrb.mxu1 %v1046_v15  ;;  %v1072_v6 = vld [vmem:[#allocation2 + $0x3b0] sm:$0xff]  ;;  %v1039_v12 = vld [vmem:[#allocation2 + $0x2a8] sm:$0xff]  ;;  %v473_v14 = vmax.f32 %v263_v53, 0.0  ;;  %v488_v15 = vmax.f32 %v278_v58, 0.0  ;;  %v1037_v7 = vld [vmem:[#allocation2 + $0x298] sm:$0xff] }
  0x30   :  { %1383 = vmatpush.msrb.mxu2 %v1061_v16  ;;  %1402 = vmatpush.msrb.mxu3 %v1078_v17  ;;  %v1749_v16 = vld [vmem:[%s2451_s0 + $0x8] sm:$0xff]  ;;  %v569_v58 = vsel %vm568_vm0, %v443_v13, 0.0  ;;  %v1052_v13 = vld [vmem:[#allocation2 + $0x310] sm:$0xff] }
  0x31   :  { %1344 = vmatpush.msrb.mxu0 %v1028_v18  ;;  %1363 = vmatpush.msrb.mxu1 %v1045_v19  ;;  %v1754_v17 = vld [vmem:[%s2451_s0 + $0x44] sm:$0xff]  ;;  %v759_v38 = vadd.f32 %v473_v14, %v458_v9  ;;  %v145_v52 = vunpack.c.l.bf16 %v1749_v16  ;;  %v205_v9 = vunpack.c.l.bf16 %v1770_v39  ;;  %v1069_v14 = vld [vmem:[#allocation2 + $0x398] sm:$0xff] }
  0x32   :  { %1384 = vmatpush.msrb.mxu2 %v1060_v20  ;;  %1403 = vmatpush.msrb.mxu3 %v1077_v21  ;;  %v1054_v19 = vld [vmem:[#allocation2 + $0x320] sm:$0xff]  ;;  %v1071_v20 = vld [vmem:[#allocation2 + $0x3a8] sm:$0xff]  ;;  %v398_v21 = vmax.f32 %v188_v50, 0.0  ;;  %v1785_v50 = vld [vmem:[%s2451_s0 + $0x170] sm:$0x11]  ;;  %v160_v53 = vunpack.c.l.bf16 %v1754_v17 }
  0x33   :  { %1345 = vmatpush.msrb.mxu0 %v1027_v22  ;;  %1364 = vmatpush.msrb.mxu1 %v1044_v23  ;;  %v413_v22 = vmax.f32 %v203_v57, 0.0  ;;  %v548_v23 = vmax.f32 %v338_v3, 0.0  ;;  %v1790_v51 = vld [vmem:[%s2451_s0 + $0x224] sm:$0xff] }
  0x34   :  { %1385 = vmatpush.msrb.mxu2 %v1059_v24  ;;  %1404 = vmatpush.msrb.mxu3 %v1076_v25  ;;  %v563_v24 = vadd.f32 %v368_v60, %v353_v59  ;;  %v1760_v25 = vld [vmem:[%s2451_s0 + $0x80] sm:$0xff]  ;;  %2461 = vst [vmem:[#allocation8_spill] sm:$0xff] %v1790_v51  ;;  %v760_v59 = vadd.f32 %v759_v38, %v488_v15 }
  0x35   :  { %1346 = vmatpush.msrb.mxu0 %v1026_v26  ;;  %1365 = vmatpush.msrb.mxu1 %v1043_v27  ;;  %v1765_v26 = vld [vmem:[%s2451_s0 + $0xbc] sm:$0xff]  ;;  %v1796_v60 = vsel %vm568_vm0, %v548_v23, 0.0  ;;  %v370_v23 = vmax.f32 %v160_v53, 0.0 }
  0x36   :  { %1386 = vmatpush.msrb.mxu2 %v1058_v28  ;;  %1405 = vmatpush.msrb.mxu3 %v1075_v29  ;;  %v1021_v27 = vld [vmem:[#allocation2 + $0x218] sm:$0xff]  ;;  %v1038_v28 = vld [vmem:[#allocation2 + $0x2a0] sm:$0xff]  ;;  %v428_v29 = vmax.f32 %v218_v0, 0.0  ;;  %v190_v3 = vunpack.c.l.bf16 %v1765_v26 }
  0x37   :  { %1347 = vmatpush.msrb.mxu0 %v1025_v33  ;;  %1366 = vmatpush.msrb.mxu1 %v1042_v34  ;;  %v503_v33 = vmax.f32 %v293_v1, 0.0  ;;  %v518_v34 = vmax.f32 %v308_v2, 0.0  ;;  %v1070_v57 = vld [vmem:[#allocation2 + $0x3a0] sm:$0xff]  ;;  %v1807_v0 = vld [vmem:[%s2451_s0 + $0x134] sm:$0xff] }
  0x38   :  { %1387 = vmatpush.msrb.mxu2 %v1057_v40  ;;  %1406 = vmatpush.msrb.mxu3 %v1074_v41  ;;  %v1775_v40 = vld [vmem:[%s2451_s0 + $0x1ac] sm:$0xff]  ;;  %v1812_v1 = vld [vmem:[%s2451_s0 + $0x260] sm:$0xff] }
  0x39   :  { %1348 = vmatpush.msrb.mxu0 %v1024_v46  ;;  %1367 = vmatpush.msrb.mxu1 %v1041_v54  ;;  %v1780_v41 = vld [vmem:[%s2451_s0 + $0x1e8] sm:$0xff]  ;;  %v564_v46 = vadd.f32 %v563_v24, %v383_v8  ;;  %v1053_v54 = vld [vmem:[#allocation2 + $0x318] sm:$0xff]  ;;  %2463 = vst [vmem:[#allocation10_spill] sm:$0xff] %v1812_v1  ;;  %v761_v8 = vadd.f32 %v760_v59, %v503_v33  ;;  %v1036_v33 = vld [vmem:[#allocation2 + $0x290] sm:$0xff] }
  0x3a   :  { %1388 = vmatpush.msrb.mxu2 %v1056_v61  ;;  %1407 = vmatpush.msrb.mxu3 %v1073_v62  ;;  %v1801_v61 = vld [vmem:[%s2451_s0 + $0x314] sm:$0x11]  ;;  %v175_v62 = vunpack.c.l.bf16 %v1760_v25  ;;  %v1817_v2 = vld [vmem:[%s2451_s0 + $0x29c] sm:$0xff]  ;;  %v1019_v24 = vld [vmem:[#allocation2 + $0x208] sm:$0xff] }
  0x3b   :  { %1349 = vmatpush.msrb.mxu0 %v1023_v63  ;;  %1368 = vmatpush.msrb.mxu1 %v1040_v4  ;;  %2462 = vst [vmem:[#allocation9_spill] sm:$0xff] %v1801_v61  ;;  %v565_v63 = vadd.f32 %v564_v46, %v398_v21  ;;  %v250_v4 = vunpack.c.l.bf16 %v1775_v40  ;;  %v1828_v21 = vld [vmem:[%s2451_s0 + $0x2d8] sm:$0xff]  ;;  %v762_v38 = vadd.f32 %v761_v8, %v518_v34  ;;  %v1051_v46 = vld [vmem:[#allocation2 + $0x308] sm:$0xff]  ;;  %v1068_v59 = vld [vmem:[#allocation2 + $0x390] sm:$0xff] }
  0x3c   :  { %1389 = vmatpush.msrb.mxu2 %v1055_v5  ;;  %1408 = vmatpush.msrb.mxu3 %v1072_v6  ;;  %2464 = vst [vmem:[#allocation11_spill] sm:$0xff] %v1817_v2  ;;  %v265_v5 = vunpack.c.l.bf16 %v1780_v41  ;;  %v1020_v6 = vld [vmem:[#allocation2 + $0x210] sm:$0xff]  ;;  %v385_v18 = vmax.f32 %v175_v62, 0.0  ;;  %v1018_v53 = vld [vmem:[#allocation2 + $0x200] sm:$0xff]  ;;  %v325_v34 = vunpack.c.l.bf16 %v1828_v21 }
  0x3d   :  { %1350 = vmatpush.msrb.mxu0 %v1022_v11  ;;  %1369 = vmatpush.msrb.mxu1 %v1039_v12  ;;  %v235_v11 = vunpack.c.l.bf16 %v1785_v50  ;;  %v280_v12 = vunpack.c.l.bf16 %v1790_v51  ;;  %v566_v15 = vadd.f32 %v565_v63, %v413_v22  ;;  %v310_v22 = vunpack.c.l.bf16 %v1817_v2  ;;  %v1050_v2 = vld [vmem:[#allocation2 + $0x300] sm:$0xff] }
  0x3e   :  { %1390 = vmatpush.msrb.mxu2 %v1054_v19  ;;  %1409 = vmatpush.msrb.mxu3 %v1071_v20  ;;  %v340_v19 = vunpack.c.l.bf16 %v1801_v61  ;;  %v355_v20 = vmax.f32 %v145_v52, 0.0  ;;  %v460_v10 = vmax.f32 %v250_v4, 0.0  ;;  %v475_v52 = vmax.f32 %v265_v5, 0.0 }
  0x3f   :  { %1351 = vmatpush.msrb.mxu0 %v1021_v27  ;;  %1370 = vmatpush.msrb.mxu1 %v1038_v28  ;;  %v220_v27 = vunpack.c.l.bf16 %v1807_v0  ;;  %v295_v28 = vunpack.c.l.bf16 %v1812_v1  ;;  %v567_v63 = vadd.f32 %v566_v15, %v428_v29  ;;  %v445_v8 = vmax.f32 %v235_v11, 0.0 }
  0x40   :  { %1391 = vmatpush.msrb.mxu2 %v1053_v54  ;;  %1410 = vmatpush.msrb.mxu3 %v1070_v57  ;;  %v1035_v54 = vld [vmem:[#allocation2 + $0x288] sm:$0xff]  ;;  %v763_v57 = vadd.f32 %v762_v38, %v533_v45  ;;  %v490_v61 = vmax.f32 %v280_v12, 0.0  ;;  %v400_v1 = vmax.f32 %v190_v3, 0.0  ;;  %v550_v51 = vmax.f32 %v340_v19, 0.0  ;;  %v1034_v45 = vld [vmem:[#allocation2 + $0x280] sm:$0xff] }
  0x41   :  { %1352 = vmatpush.msrb.mxu0 %v1020_v6  ;;  %1371 = vmatpush.msrb.mxu1 %v1037_v7  ;;  %v1067_v6 = vld [vmem:[#allocation2 + $0x388] sm:$0xff]  ;;  %v570_v7 = vadd.f32 %v569_v58, %v567_v63  ;;  %v590_v29 = vadd.f32 %v370_v23, %v355_v20  ;;  %v415_v4 = vmax.f32 %v205_v9, 0.0  ;;  %v505_v5 = vmax.f32 %v295_v28, 0.0 }
  0x42   :  { %1392 = vmatpush.msrb.mxu2 %v1052_v13  ;;  %1411 = vmatpush.msrb.mxu3 %v1069_v14  ;;  %v765_v62 = vadd.f32 %v1796_v60, %v763_v57  ;;  %v785_v13 = vadd.f32 %v475_v52, %v460_v10  ;;  %v430_v12 = vmax.f32 %v220_v27, 0.0  ;;  %v520_v14 = vmax.f32 %v310_v22, 0.0 }
  0x43   :  { %1353 = vmatpush.msrb.mxu0 %v1019_v24  ;;  %1372 = vmatpush.msrb.mxu1 %v1036_v33  ;;  %v571_v11 = vrot.slane %v570_v7, 4  ;;  %v591_v15 = vadd.f32 %v590_v29, %v385_v18  ;;  %v1066_v24 = vld [vmem:[#allocation2 + $0x380] sm:$0xff]  ;;  %v535_v3 = vmax.f32 %v325_v34, 0.0  ;;  %v595_v19 = vsel %vm568_vm0, %v445_v8, 0.0 }
  0x44   :  { %1393 = vmatpush.msrb.mxu2 %v1051_v46  ;;  %1412 = vmatpush.msrb.mxu3 %v1068_v59  ;;  %v766_v58 = vrot.slane %v765_v62, 4  ;;  %v786_v20 = vadd.f32 %v785_v13, %v490_v61  ;;  %v790_v10 = vsel %vm568_vm0, %v550_v51, 0.0  ;;  %v174_v9 = vunpack.c.h.bf16 %v1674_v32 }
  0x45   :  { %1354 = vmatpush.msrb.mxu0 %v1018_v53  ;;  %1373 = vmatpush.msrb.mxu1 %v1035_v54  ;;  %v572_v23 = vadd.f32 %v571_v11, %v570_v7  ;;  %v592_v60 = vadd.f32 %v591_v15, %v400_v1  ;;  %v189_v18 = vunpack.c.h.bf16 %v1679_v35  ;;  %v219_v22 = vunpack.c.h.bf16 %v1689_v37 }
  0x46   :  { %1394 = vmatpush.msrb.mxu2 %v1050_v2  ;;  %1413 = vmatpush.msrb.mxu3 %v1067_v6  ;;  %v767_v33 = vadd.f32 %v766_v58, %v765_v62  ;;  %v787_v38 = vadd.f32 %v786_v20, %v505_v5  ;;  %v204_v2 = vunpack.c.h.bf16 %v1684_v36  ;;  %v234_v61 = vunpack.c.h.bf16 %v1696_v42 }
  0x47   :  { %1374 = vmatpush.msrb.mxu1 %v1034_v45  ;;  %v573_v27 = vrot.slane %v572_v23, 2  ;;  %v593_v28 = vadd.f32 %v592_v60, %v415_v4  ;;  %v249_v51 = vunpack.c.h.bf16 %v1701_v43  ;;  %v264_v59 = vunpack.c.h.bf16 %v1706_v44 }
  0x48   :  { %1414 = vmatpush.msrb.mxu3 %v1066_v24  ;;  %v768_v46 = vrot.slane %v767_v33, 2  ;;  %v788_v1 = vadd.f32 %v787_v38, %v520_v14  ;;  %v279_v52 = vunpack.c.h.bf16 %v1712_v47  ;;  %v294_v35 = vunpack.c.h.bf16 %v1717_v48 }
  0x49   :  { %v574_v32 = vadd.f32 %v573_v27, %v572_v23  ;;  %v594_v63 = vadd.f32 %v593_v28, %v430_v12  ;;  %v309_v54 = vunpack.c.h.bf16 %v1722_v49  ;;  %v339_v37 = vunpack.c.h.bf16 %v1736_v56  ;;  %v1097_v12 = vld [vmem:[#allocation2 + $0x478] sm:$0xff] }
  0x4a   :  { %v769_v53 = vadd.f32 %v768_v46, %v767_v33  ;;  %v789_v36 = vadd.f32 %v788_v1, %v535_v3  ;;  %v2465_v34 = vunpack.c.h.bf16 %v1664_v30  ;;  %v2466_v43 = vunpack.c.h.bf16 %v1669_v31 }
  0x4b   :  { %v575_v57 = vrot.slane %v574_v32, 1  ;;  %v596_v42 = vadd.f32 %v595_v19, %v594_v63  ;;  %v324_v47 = vunpack.c.h.bf16 %v1731_v55  ;;  %v459_v29 = vmax.f32 %v249_v51, 0.0 }
  0x4c   :  { %v354_v8 = vmax.f32 %v2465_v34, 0.0  ;;  %v369_v44 = vmax.f32 %v2466_v43, 0.0  ;;  %v770_v6 = vrot.slane %v769_v53, 1  ;;  %v791_v7 = vadd.f32 %v790_v10, %v789_v36  ;;  %v1096_v36 = vld [vmem:[#allocation2 + $0x470] sm:$0xff]  ;;  %v2467_v34 = vld [vmem:[#allocation8_spill] sm:$0xff]  ;;  %v1129_v43 = vld [vmem:[#allocation2 + $0x578] sm:$0xff] }
  0x4d   :  { %v576_v48 = vadd.f32 %v575_v57, %v574_v32  ;;  %v597_v62 = vrot.slane %v596_v42, 4  ;;  %v384_v4 = vmax.f32 %v174_v9, 0.0  ;;  %v474_v5 = vmax.f32 %v264_v59, 0.0 }
  0x4e   :  { %v771_v49 = vadd.f32 %v770_v6, %v769_v53  ;;  %v792_v13 = vrot.slane %v791_v7, 4  ;;  %v399_v56 = vmax.f32 %v189_v18, 0.0  ;;  %v489_v45 = vmax.f32 %v279_v52, 0.0 }
  0x4f   :  { %v598_v11 = vadd.f32 %v597_v62, %v596_v42  ;;  %v444_v30 = vmax.f32 %v234_v61, 0.0  ;;  %v549_v14 = vmax.f32 %v339_v37, 0.0  ;;  %v577_v15 = vadd.f32 %v369_v44, %v354_v8  ;;  %v1095_v8 = vld [vmem:[#allocation2 + $0x468] sm:$0xff] }
  0x50   :  { %v1229_v31 = vsel %vm1228_vm1, %v771_v49, %v576_v48  ;;  %v793_v24 = vadd.f32 %v792_v13, %v791_v7  ;;  %v504_v58 = vmax.f32 %v294_v35, 0.0  ;;  %v772_v3 = vadd.f32 %v474_v5, %v459_v29  ;;  %v2469_v29 = vld [vmem:[#allocation10_spill] sm:$0xff]  ;;  %v2470_v48 = vld [vmem:[#allocation11_spill] sm:$0xff] }
  0x51   :  { %1275 = vmatmul.f32.vlgmr.msra.gmra.mxu0 %v1229_v31  ;;  %v599_v55 = vrot.slane %v598_v11, 2  ;;  %v414_v19 = vmax.f32 %v204_v2, 0.0  ;;  %v429_v20 = vmax.f32 %v219_v22, 0.0  ;;  %v578_v23 = vadd.f32 %v577_v15, %v384_v4  ;;  %v1094_v4 = vld [vmem:[#allocation2 + $0x460] sm:$0xff] }
  0x52   :  { %v794_v60 = vrot.slane %v793_v24, 2  ;;  %1419 = vmatpush.msra.mxu0 %v1097_v12  ;;  %v519_v10 = vmax.f32 %v309_v54, 0.0  ;;  %v534_v9 = vmax.f32 %v324_v47, 0.0  ;;  %v773_v33 = vadd.f32 %v772_v3, %v489_v45 }
  0x53   :  { %v600_v38 = vadd.f32 %v599_v55, %v598_v11  ;;  %v579_v18 = vadd.f32 %v578_v23, %v399_v56  ;;  %v582_v27 = vsel %vm568_vm0, %v444_v30, 0.0  ;;  %v777_v28 = vsel %vm568_vm0, %v549_v14, 0.0  ;;  %v1128_v56 = vld [vmem:[#allocation2 + $0x570] sm:$0xff]  ;;  %v1875_v23 = vld [vmem:[%s2451_s0 + $0x18] sm:$0xff] }
  0x54   :  { %v795_v61 = vadd.f32 %v794_v60, %v793_v24  ;;  %v774_v46 = vadd.f32 %v773_v33, %v504_v58  ;;  %v146_v1 = vunpack.c.h.bf16 %v1749_v16  ;;  %v161_v51 = vunpack.c.h.bf16 %v1754_v17  ;;  %1420 = vmatpush.msra.mxu0 %v1096_v36  ;;  %v1127_v58 = vld [vmem:[#allocation2 + $0x568] sm:$0xff]  ;;  %v1126_v33 = vld [vmem:[#allocation2 + $0x560] sm:$0xff] }
  0x55   :  { %v601_v2 = vrot.slane %v600_v38, 1  ;;  %v580_v22 = vadd.f32 %v579_v18, %v414_v19  ;;  %v176_v59 = vunpack.c.h.bf16 %v1760_v25  ;;  %v191_v32 = vunpack.c.h.bf16 %v1765_v26  ;;  %v1885_v18 = vld [vmem:[%s2451_s0 + $0x90] sm:$0xff]  ;;  %v1913_v36 = vld [vmem:[%s2451_s0 + $0x1bc] sm:$0xff] }
  0x56   :  { %v796_v63 = vrot.slane %v795_v61, 1  ;;  %v775_v52 = vadd.f32 %v774_v46, %v519_v10  ;;  %v206_v35 = vunpack.c.h.bf16 %v1770_v39  ;;  %v221_v53 = vunpack.c.h.bf16 %v1807_v0  ;;  %v2468_v39 = vld [vmem:[#allocation9_spill] sm:$0xff]  ;;  %1421 = vmatpush.msra.mxu0 %v1095_v8 }
  0x57   :  { %v602_v54 = vadd.f32 %v601_v2, %v600_v38  ;;  %v581_v37 = vadd.f32 %v580_v22, %v429_v20  ;;  %v251_v57 = vunpack.c.h.bf16 %v1775_v40  ;;  %v266_v16 = vunpack.c.h.bf16 %v1780_v41  ;;  %v1880_v38 = vld [vmem:[%s2451_s0 + $0x54] sm:$0xff] }
  0x58   :  { %v797_v17 = vadd.f32 %v796_v63, %v795_v61  ;;  %v776_v42 = vadd.f32 %v775_v52, %v534_v9  ;;  %v236_v25 = vunpack.c.h.bf16 %v1785_v50  ;;  %v281_v26 = vunpack.c.h.bf16 %v2467_v34  ;;  %1422 = vmatpush.msra.mxu0 %v1094_v4  ;;  %v1907_v63 = vld [vmem:[%s2451_s0 + $0x180] sm:$0x11] }
  0x59   :  { %v583_v44 = vadd.f32 %v582_v27, %v581_v37  ;;  %v341_v6 = vunpack.c.h.bf16 %v2468_v39  ;;  %v356_v0 = vmax.f32 %v146_v1, 0.0  ;;  %v371_v7 = vmax.f32 %v161_v51, 0.0  ;;  %v1891_v1 = vld [vmem:[%s2451_s0 + $0xcc] sm:$0xff] }
  0x5a   :  { %v1231_v47 = vsel %vm1228_vm1, %v797_v17, %v602_v54  ;;  %v778_v40 = vadd.f32 %v777_v28, %v776_v42  ;;  %v296_v41 = vunpack.c.h.bf16 %v2469_v29  ;;  %v311_v62 = vunpack.c.h.bf16 %v2470_v48  ;;  %v1896_v51 = vld [vmem:[%s2451_s0 + $0x108] sm:$0xff]  ;;  %v1918_v54 = vld [vmem:[%s2451_s0 + $0x1f8] sm:$0xff] }
  0x5b   :  { %1315 = vmatmul.f32.vlgmr.msra.gmra.mxu2 %v1231_v47  ;;  %v584_v50 = vrot.slane %v583_v44, 4  ;;  %v386_v5 = vmax.f32 %v176_v59, 0.0  ;;  %v461_v49 = vmax.f32 %v251_v57, 0.0  ;;  %v476_v13 = vmax.f32 %v266_v16, 0.0  ;;  %v1925_v42 = vld [vmem:[%s2451_s0 + $0x234] sm:$0xff]  ;;  %v1944_v29 = vld [vmem:[%s2451_s0 + $0x2ac] sm:$0xff] }
  0x5c   :  { %1459 = vmatpush.msra.mxu2 %v1129_v43  ;;  %v779_v45 = vrot.slane %v778_v40, 4  ;;  %v326_v11 = vunpack.c.h.bf16 %v1828_v21  ;;  %v446_v12 = vmax.f32 %v236_v25, 0.0  ;;  %v491_v30 = vmax.f32 %v281_v26, 0.0  ;;  %v1930_v25 = vld [vmem:[%s2451_s0 + $0x270] sm:$0xff] }
  0x5d   :  { %v585_v14 = vadd.f32 %v584_v50, %v583_v44  ;;  %v401_v15 = vmax.f32 %v191_v32, 0.0  ;;  %v551_v31 = vmax.f32 %v341_v6, 0.0  ;;  %v603_v24 = vadd.f32 %v371_v7, %v356_v0  ;;  %v1902_v32 = vld [vmem:[%s2451_s0 + $0x144] sm:$0xff]  ;;  %v1093_v0 = vld [vmem:[#allocation2 + $0x458] sm:$0xff] }
  0x5e   :  { %v780_v3 = vadd.f32 %v779_v45, %v778_v40  ;;  %v416_v55 = vmax.f32 %v206_v35, 0.0  ;;  %v506_v19 = vmax.f32 %v296_v41, 0.0  ;;  %v798_v20 = vadd.f32 %v476_v13, %v461_v49  ;;  %1460 = vmatpush.msra.mxu2 %v1128_v56  ;;  %v1937_v44 = vld [vmem:[%s2451_s0 + $0x324] sm:$0x11]  ;;  %v1125_v7 = vld [vmem:[#allocation2 + $0x558] sm:$0xff]  ;;  %1423 = vmatpush.msra.mxu0 %v1093_v0 }
  0x5f   :  { %v586_v60 = vrot.slane %v585_v14, 2  ;;  %v431_v10 = vmax.f32 %v221_v53, 0.0  ;;  %v521_v21 = vmax.f32 %v311_v62, 0.0  ;;  %v604_v9 = vadd.f32 %v603_v24, %v386_v5  ;;  %v1949_v41 = vld [vmem:[%s2451_s0 + $0x2e8] sm:$0xff]  ;;  %v1113_v56 = vld [vmem:[#allocation2 + $0x4f8] sm:$0xff] }
  0x60   :  { %v781_v27 = vrot.slane %v780_v3, 2  ;;  %v536_v28 = vmax.f32 %v326_v11, 0.0  ;;  %v608_v61 = vsel %vm568_vm0, %v446_v12, 0.0  ;;  %v799_v46 = vadd.f32 %v798_v20, %v491_v30  ;;  %1461 = vmatpush.msra.mxu2 %v1127_v58  ;;  %v1112_v58 = vld [vmem:[#allocation2 + $0x4f0] sm:$0xff]  ;;  %v1988_v0 = vld [vmem:[%s2451_s0 + $0x13c] sm:$0xff] }
  0x61   :  { %v587_v2 = vadd.f32 %v586_v60, %v585_v14  ;;  %v605_v22 = vadd.f32 %v604_v9, %v401_v15  ;;  %v803_v59 = vsel %vm568_vm0, %v551_v31, 0.0  ;;  %v149_v52 = vunpack.c.l.bf16 %v1875_v23 }
  0x62   :  { %v782_v35 = vadd.f32 %v781_v27, %v780_v3  ;;  %v800_v53 = vadd.f32 %v799_v46, %v506_v19  ;;  %1462 = vmatpush.msra.mxu2 %v1126_v33  ;;  %v164_v37 = vunpack.c.l.bf16 %v1880_v38  ;;  %v179_v57 = vunpack.c.l.bf16 %v1885_v18  ;;  %v1111_v33 = vld [vmem:[#allocation2 + $0x4e8] sm:$0xff]  ;;  %v1962_v46 = vld [vmem:[%s2451_s0 + $0x10] sm:$0xff] }
  0x63   :  { %v588_v16 = vrot.slane %v587_v2, 1  ;;  %v606_v17 = vadd.f32 %v605_v22, %v416_v55  ;;  %v194_v34 = vunpack.c.l.bf16 %v1891_v1  ;;  %v209_v26 = vunpack.c.l.bf16 %v1896_v51 }
  0x64   :  { %v783_v8 = vrot.slane %v782_v35, 1  ;;  %v801_v43 = vadd.f32 %v800_v53, %v521_v21  ;;  %v224_v39 = vunpack.c.l.bf16 %v1902_v32  ;;  %v239_v6 = vunpack.c.l.bf16 %v1907_v63  ;;  %1463 = vmatpush.msra.mxu2 %v1125_v7 }
  0x65   :  { %v589_v47 = vadd.f32 %v588_v16, %v587_v2  ;;  %v607_v40 = vadd.f32 %v606_v17, %v431_v10  ;;  %v254_v48 = vunpack.c.l.bf16 %v1913_v36  ;;  %v269_v62 = vunpack.c.l.bf16 %v1918_v54  ;;  %v1110_v17 = vld [vmem:[#allocation2 + $0x4e0] sm:$0xff] }
  0x66   :  { %v784_v4 = vadd.f32 %v783_v8, %v782_v35  ;;  %v802_v50 = vadd.f32 %v801_v43, %v536_v28  ;;  %v284_v5 = vunpack.c.l.bf16 %v1925_v42  ;;  %v299_v49 = vunpack.c.l.bf16 %v1930_v25  ;;  %v1967_v35 = vld [vmem:[%s2451_s0 + $0x4c] sm:$0xff] }
  0x67   :  { %v609_v13 = vadd.f32 %v608_v61, %v607_v40  ;;  %v344_v45 = vunpack.c.l.bf16 %v1937_v44  ;;  %v359_v11 = vmax.f32 %v149_v52, 0.0  ;;  %v374_v12 = vmax.f32 %v164_v37, 0.0 }
  0x68   :  { %v1230_v30 = vsel %vm1228_vm1, %v784_v4, %v589_v47  ;;  %v804_v14 = vadd.f32 %v803_v59, %v802_v50  ;;  %v314_v15 = vunpack.c.l.bf16 %v1944_v29  ;;  %v329_v31 = vunpack.c.l.bf16 %v1949_v41  ;;  %v2000_v4 = vld [vmem:[%s2451_s0 + $0x1b4] sm:$0xff] }
  0x69   :  { %1295 = vmatmul.f32.vlgmr.msra.gmra.mxu1 %v1230_v30  ;;  %v610_v24 = vrot.slane %v609_v13, 4  ;;  %v389_v3 = vmax.f32 %v179_v57, 0.0  ;;  %v464_v55 = vmax.f32 %v254_v48, 0.0  ;;  %v479_v19 = vmax.f32 %v269_v62, 0.0  ;;  %v1995_v62 = vld [vmem:[%s2451_s0 + $0x178] sm:$0x11] }
  0x6a   :  { %v805_v20 = vrot.slane %v804_v14, 4  ;;  %1439 = vmatpush.msra.mxu1 %v1113_v56  ;;  %v404_v60 = vmax.f32 %v194_v34, 0.0  ;;  %v449_v10 = vmax.f32 %v239_v6, 0.0  ;;  %v494_v21 = vmax.f32 %v284_v5, 0.0  ;;  %v1972_v34 = vld [vmem:[%s2451_s0 + $0x88] sm:$0xff]  ;;  %v1983_v6 = vld [vmem:[%s2451_s0 + $0x100] sm:$0xff] }
  0x6b   :  { %v611_v9 = vadd.f32 %v610_v24, %v609_v13  ;;  %v419_v27 = vmax.f32 %v209_v26, 0.0  ;;  %v554_v28 = vmax.f32 %v344_v45, 0.0  ;;  %v642_v61 = vadd.f32 %v374_v12, %v359_v11  ;;  %v1977_v26 = vld [vmem:[%s2451_s0 + $0xc4] sm:$0xff]  ;;  %v2006_v13 = vld [vmem:[%s2451_s0 + $0x1f0] sm:$0xff] }
  0x6c   :  { %v806_v2 = vadd.f32 %v805_v20, %v804_v14  ;;  %1440 = vmatpush.msra.mxu1 %v1112_v58  ;;  %v434_v22 = vmax.f32 %v224_v39, 0.0  ;;  %v509_v59 = vmax.f32 %v299_v49, 0.0  ;;  %v837_v52 = vadd.f32 %v479_v19, %v464_v55  ;;  %v2011_v56 = vld [vmem:[%s2451_s0 + $0x22c] sm:$0xff]  ;;  %v2030_v55 = vld [vmem:[%s2451_s0 + $0x2a4] sm:$0xff] }
  0x6d   :  { %v612_v53 = vrot.slane %v611_v9, 2  ;;  %v524_v37 = vmax.f32 %v314_v15, 0.0  ;;  %v539_v57 = vmax.f32 %v329_v31, 0.0  ;;  %v643_v16 = vadd.f32 %v642_v61, %v389_v3  ;;  %v2018_v14 = vld [vmem:[%s2451_s0 + $0x268] sm:$0xff]  ;;  %v2023_v15 = vld [vmem:[%s2451_s0 + $0x31c] sm:$0x11] }
  0x6e   :  { %v807_v8 = vrot.slane %v806_v2, 2  ;;  %1441 = vmatpush.msra.mxu1 %v1111_v33  ;;  %v647_v43 = vsel %vm568_vm0, %v449_v10, 0.0  ;;  %v838_v39 = vadd.f32 %v837_v52, %v494_v21  ;;  %v147_v7 = vunpack.c.l.bf16 %v1962_v46  ;;  %v2037_v21 = vld [vmem:[%s2451_s0 + $0x2e0] sm:$0xff] }
  0x6f   :  { %v613_v47 = vadd.f32 %v612_v53, %v611_v9  ;;  %v644_v40 = vadd.f32 %v643_v16, %v404_v60  ;;  %v842_v48 = vsel %vm568_vm0, %v554_v28, 0.0  ;;  %v162_v50 = vunpack.c.l.bf16 %v1967_v35  ;;  %2471 = vst [vmem:[#allocation8_spill] sm:$0xff] %v2037_v21 }
  0x70   :  { %v808_v5 = vadd.f32 %v807_v8, %v806_v2  ;;  %v839_v49 = vadd.f32 %v838_v39, %v509_v59  ;;  %1442 = vmatpush.msra.mxu1 %v1110_v17  ;;  %v177_v45 = vunpack.c.l.bf16 %v1972_v34  ;;  %v192_v11 = vunpack.c.l.bf16 %v1977_v26  ;;  %v1145_v59 = vld [vmem:[#allocation2 + $0x5f8] sm:$0xff] }
  0x71   :  { %v614_v12 = vrot.slane %v613_v47, 1  ;;  %v645_v30 = vadd.f32 %v644_v40, %v419_v27  ;;  %v207_v31 = vunpack.c.l.bf16 %v1983_v6  ;;  %v222_v24 = vunpack.c.l.bf16 %v1988_v0 }
  0x72   :  { %v809_v58 = vrot.slane %v808_v5, 1  ;;  %v840_v3 = vadd.f32 %v839_v49, %v524_v37  ;;  %v237_v19 = vunpack.c.l.bf16 %v1995_v62  ;;  %v252_v20 = vunpack.c.l.bf16 %v2000_v4 }
  0x73   :  { %v615_v60 = vadd.f32 %v614_v12, %v613_v47  ;;  %v646_v10 = vadd.f32 %v645_v30, %v434_v22  ;;  %v267_v9 = vunpack.c.l.bf16 %v2006_v13  ;;  %v282_v33 = vunpack.c.l.bf16 %v2011_v56  ;;  %v1144_v47 = vld [vmem:[#allocation2 + $0x5f0] sm:$0xff] }
  0x74   :  { %v810_v27 = vadd.f32 %v809_v58, %v808_v5  ;;  %v841_v28 = vadd.f32 %v840_v3, %v539_v57  ;;  %v297_v61 = vunpack.c.l.bf16 %v2018_v14  ;;  %v342_v2 = vunpack.c.l.bf16 %v2023_v15  ;;  %v1143_v3 = vld [vmem:[#allocation2 + $0x5e8] sm:$0xff] }
  0x75   :  { %v648_v52 = vadd.f32 %v647_v43, %v646_v10  ;;  %v312_v53 = vunpack.c.l.bf16 %v2030_v55  ;;  %v357_v22 = vmax.f32 %v147_v7, 0.0  ;;  %v372_v37 = vmax.f32 %v162_v50, 0.0 }
  0x76   :  { %v1232_v16 = vsel %vm1228_vm1, %v810_v27, %v615_v60  ;;  %v843_v17 = vadd.f32 %v842_v48, %v841_v28  ;;  %v327_v8 = vunpack.c.l.bf16 %v2037_v21  ;;  %v462_v39 = vmax.f32 %v252_v20, 0.0  ;;  %v1142_v21 = vld [vmem:[#allocation2 + $0x5e0] sm:$0xff] }
  0x77   :  { %1335 = vmatmul.f32.vlgmr.msra.gmra.mxu3 %v1232_v16  ;;  %v649_v40 = vrot.slane %v648_v52, 4  ;;  %v387_v57 = vmax.f32 %v177_v45, 0.0  ;;  %v477_v5 = vmax.f32 %v267_v9, 0.0  ;;  %v492_v49 = vmax.f32 %v282_v33, 0.0 }
  0x78   :  { %1479 = vmatpush.msra.mxu3 %v1145_v59  ;;  %v844_v12 = vrot.slane %v843_v17, 4  ;;  %v402_v30 = vmax.f32 %v192_v11, 0.0  ;;  %v447_v43 = vmax.f32 %v237_v19, 0.0  ;;  %v552_v58 = vmax.f32 %v342_v2, 0.0 }
  0x79   :  { %v650_v7 = vadd.f32 %v649_v40, %v648_v52  ;;  %v507_v50 = vmax.f32 %v297_v61, 0.0  ;;  %v616_v10 = vadd.f32 %v372_v37, %v357_v22  ;;  %v811_v60 = vadd.f32 %v477_v5, %v462_v39  ;;  %v1124_v5 = vld [vmem:[#allocation2 + $0x550] sm:$0xff] }
  0x7a   :  { %1480 = vmatpush.msra.mxu3 %v1144_v47  ;;  %v845_v48 = vadd.f32 %v844_v12, %v843_v17  ;;  %v417_v27 = vmax.f32 %v207_v31, 0.0  ;;  %v432_v20 = vmax.f32 %v222_v24, 0.0  ;;  %v522_v28 = vmax.f32 %v312_v53, 0.0  ;;  %1464 = vmatpush.msra.mxu2 %v1124_v5 }
  0x7b   :  { %v651_v16 = vrot.slane %v650_v7, 2  ;;  %v537_v45 = vmax.f32 %v327_v8, 0.0  ;;  %v617_v9 = vadd.f32 %v616_v10, %v387_v57  ;;  %v812_v33 = vadd.f32 %v811_v60, %v492_v49  ;;  %v1092_v57 = vld [vmem:[#allocation2 + $0x450] sm:$0xff] }
  0x7c   :  { %1481 = vmatpush.msra.mxu3 %v1143_v3  ;;  %v846_v59 = vrot.slane %v845_v48, 2  ;;  %v621_v11 = vsel %vm568_vm0, %v447_v43, 0.0  ;;  %v816_v19 = vsel %vm568_vm0, %v552_v58, 0.0  ;;  %v150_v61 = vunpack.c.h.bf16 %v1875_v23  ;;  %v1109_v23 = vld [vmem:[#allocation2 + $0x4d8] sm:$0xff]  ;;  %1424 = vmatpush.msra.mxu0 %v1092_v57 }
  0x7d   :  { %v652_v2 = vadd.f32 %v651_v16, %v650_v7  ;;  %v618_v52 = vadd.f32 %v617_v9, %v402_v30  ;;  %v813_v22 = vadd.f32 %v812_v33, %v507_v50  ;;  %v165_v31 = vunpack.c.h.bf16 %v1880_v38  ;;  %1443 = vmatpush.msra.mxu1 %v1109_v23 }
  0x7e   :  { %v847_v24 = vadd.f32 %v846_v59, %v845_v48  ;;  %1482 = vmatpush.msra.mxu3 %v1142_v21  ;;  %v180_v53 = vunpack.c.h.bf16 %v1885_v18  ;;  %v195_v37 = vunpack.c.h.bf16 %v1891_v1  ;;  %v210_v17 = vunpack.c.h.bf16 %v1896_v51  ;;  %v1141_v18 = vld [vmem:[#allocation2 + $0x5d8] sm:$0xff] }
  0x7f   :  { %v653_v8 = vrot.slane %v652_v2, 1  ;;  %v619_v39 = vadd.f32 %v618_v52, %v417_v27  ;;  %v814_v47 = vadd.f32 %v813_v22, %v522_v28  ;;  %v225_v40 = vunpack.c.h.bf16 %v1902_v32 }
  0x80   :  { %v848_v49 = vrot.slane %v847_v24, 1  ;;  %v240_v12 = vunpack.c.h.bf16 %v1907_v63  ;;  %v255_v38 = vunpack.c.h.bf16 %v1913_v36  ;;  %v270_v21 = vunpack.c.h.bf16 %v1918_v54  ;;  %1483 = vmatpush.msra.mxu3 %v1141_v18 }
  0x81   :  { %v654_v1 = vadd.f32 %v653_v8, %v652_v2  ;;  %v620_v51 = vadd.f32 %v619_v39, %v432_v20  ;;  %v815_v30 = vadd.f32 %v814_v47, %v537_v45  ;;  %v285_v43 = vunpack.c.h.bf16 %v1925_v42 }
  0x82   :  { %v849_v32 = vadd.f32 %v848_v49, %v847_v24  ;;  %v345_v58 = vunpack.c.h.bf16 %v1937_v44  ;;  %v360_v3 = vmax.f32 %v150_v61, 0.0  ;;  %v375_v7 = vmax.f32 %v165_v31, 0.0 }
  0x83   :  { %v622_v63 = vadd.f32 %v621_v11, %v620_v51  ;;  %v817_v50 = vadd.f32 %v816_v19, %v815_v30  ;;  %v300_v36 = vunpack.c.h.bf16 %v1930_v25  ;;  %v315_v54 = vunpack.c.h.bf16 %v1944_v29  ;;  %v1091_v51 = vld [vmem:[#allocation2 + $0x448] sm:$0xff]  ;;  %v1108_v30 = vld [vmem:[#allocation2 + $0x4d0] sm:$0xff] }
  0x84   :  { %v1235_v10 = vsel %vm1228_vm1, %v849_v32, %v654_v1  ;;  %v390_v60 = vmax.f32 %v180_v53, 0.0  ;;  %v465_v48 = vmax.f32 %v255_v38, 0.0  ;;  %v480_v27 = vmax.f32 %v270_v21, 0.0  ;;  %1425 = vmatpush.msra.mxu0 %v1091_v51  ;;  %1444 = vmatpush.msra.mxu1 %v1108_v30 }
  0x85   :  { %1395 = vmatmul.f32.vlgmr.msrb.gmra.mxu2 %v1235_v10  ;;  %v623_v42 = vrot.slane %v622_v63, 4  ;;  %v818_v20 = vrot.slane %v817_v50, 4  ;;  %v330_v28 = vunpack.c.h.bf16 %v1949_v41  ;;  %v495_v16 = vmax.f32 %v285_v43, 0.0  ;;  %v1139_v10 = vld [vmem:[#allocation2 + $0x5c8] sm:$0xff] }
  0x86   :  { %v405_v44 = vmax.f32 %v195_v37, 0.0  ;;  %v450_v45 = vmax.f32 %v240_v12, 0.0  ;;  %v555_v9 = vmax.f32 %v345_v58, 0.0  ;;  %v655_v33 = vadd.f32 %v375_v7, %v360_v3  ;;  %v1107_v3 = vld [vmem:[#allocation2 + $0x4c8] sm:$0xff] }
  0x87   :  { %v624_v59 = vadd.f32 %v623_v42, %v622_v63  ;;  %v819_v11 = vadd.f32 %v818_v20, %v817_v50  ;;  %v510_v25 = vmax.f32 %v300_v36, 0.0  ;;  %v850_v19 = vadd.f32 %v480_v27, %v465_v48  ;;  %1445 = vmatpush.msra.mxu1 %v1107_v3  ;;  %v1106_v27 = vld [vmem:[#allocation2 + $0x4c0] sm:$0xff]  ;;  %v1121_v42 = vld [vmem:[#allocation2 + $0x538] sm:$0xff] }
  0x88   :  { %v420_v29 = vmax.f32 %v210_v17, 0.0  ;;  %v435_v61 = vmax.f32 %v225_v40, 0.0  ;;  %v525_v2 = vmax.f32 %v315_v54, 0.0  ;;  %v656_v52 = vadd.f32 %v655_v33, %v390_v60  ;;  %v1122_v54 = vld [vmem:[#allocation2 + $0x540] sm:$0xff] }
  0x89   :  { %v625_v22 = vrot.slane %v624_v59, 2  ;;  %v820_v31 = vrot.slane %v819_v11, 2  ;;  %v540_v24 = vmax.f32 %v330_v28, 0.0  ;;  %v851_v53 = vadd.f32 %v850_v19, %v495_v16  ;;  %1446 = vmatpush.msra.mxu1 %v1106_v27  ;;  %v2123_v3 = vld [vmem:[%s2451_s0 + $0x200] sm:$0xff]  ;;  %v1101_v27 = vld [vmem:[#allocation2 + $0x498] sm:$0xff] }
  0x8a   :  { %v657_v8 = vadd.f32 %v656_v52, %v405_v44  ;;  %v660_v41 = vsel %vm568_vm0, %v450_v45, 0.0  ;;  %v855_v37 = vsel %vm568_vm0, %v555_v9, 0.0  ;;  %v148_v39 = vunpack.c.h.bf16 %v1962_v46  ;;  %v1123_v46 = vld [vmem:[#allocation2 + $0x548] sm:$0xff]  ;;  %v1138_v44 = vld [vmem:[#allocation2 + $0x5c0] sm:$0xff]  ;;  %v1105_v45 = vld [vmem:[#allocation2 + $0x4b8] sm:$0xff] }
  0x8b   :  { %v626_v47 = vadd.f32 %v625_v22, %v624_v59  ;;  %v821_v57 = vadd.f32 %v820_v31, %v819_v11  ;;  %v852_v23 = vadd.f32 %v851_v53, %v510_v25  ;;  %v163_v5 = vunpack.c.h.bf16 %v1967_v35  ;;  %1465 = vmatpush.msra.mxu2 %v1123_v46  ;;  %v1088_v11 = vld [vmem:[#allocation2 + $0x430] sm:$0xff]  ;;  %v2083_v22 = vld [vmem:[%s2451_s0 + $0x20] sm:$0xff]  ;;  %1447 = vmatpush.msra.mxu1 %v1105_v45 }
  0x8c   :  { %v658_v17 = vadd.f32 %v657_v8, %v420_v29  ;;  %v178_v40 = vunpack.c.h.bf16 %v1972_v34  ;;  %v193_v49 = vunpack.c.h.bf16 %v1977_v26  ;;  %v208_v12 = vunpack.c.h.bf16 %v1983_v6  ;;  %v1140_v34 = vld [vmem:[#allocation2 + $0x5d0] sm:$0xff]  ;;  %v1090_v26 = vld [vmem:[#allocation2 + $0x440] sm:$0xff] }
  0x8d   :  { %v627_v38 = vrot.slane %v626_v47, 1  ;;  %v822_v21 = vrot.slane %v821_v57, 1  ;;  %v853_v18 = vadd.f32 %v852_v23, %v525_v2  ;;  %v223_v1 = vunpack.c.h.bf16 %v1988_v0  ;;  %1484 = vmatpush.msra.mxu3 %v1140_v34  ;;  %1426 = vmatpush.msra.mxu0 %v1090_v26  ;;  %v1120_v25 = vld [vmem:[#allocation2 + $0x530] sm:$0xff]  ;;  %v2472_v29 = vld [vmem:[#allocation8_spill] sm:$0xff] }
  0x8e   :  { %v659_v43 = vadd.f32 %v658_v17, %v435_v61  ;;  %v238_v32 = vunpack.c.h.bf16 %v1995_v62  ;;  %v253_v35 = vunpack.c.h.bf16 %v2000_v4  ;;  %v268_v58 = vunpack.c.h.bf16 %v2006_v13  ;;  %v1089_v13 = vld [vmem:[#allocation2 + $0x438] sm:$0xff]  ;;  %1466 = vmatpush.msra.mxu2 %v1122_v54  ;;  %v1086_v6 = vld [vmem:[#allocation2 + $0x420] sm:$0xff]  ;;  %v2107_v46 = vld [vmem:[%s2451_s0 + $0x110] sm:$0xff] }
  0x8f   :  { %v628_v7 = vadd.f32 %v627_v38, %v626_v47  ;;  %v823_v63 = vadd.f32 %v822_v21, %v821_v57  ;;  %v854_v50 = vadd.f32 %v853_v18, %v540_v24  ;;  %v283_v36 = vunpack.c.h.bf16 %v2011_v56  ;;  %1485 = vmatpush.msra.mxu3 %v1139_v10  ;;  %1427 = vmatpush.msra.mxu0 %v1089_v13  ;;  %v2093_v47 = vld [vmem:[%s2451_s0 + $0x98] sm:$0xff]  ;;  %v1135_v0 = vld [vmem:[#allocation2 + $0x5a8] sm:$0xff]  ;;  %v1134_v13 = vld [vmem:[#allocation2 + $0x5a0] sm:$0xff] }
  0x90   :  { %v661_v60 = vadd.f32 %v660_v41, %v659_v43  ;;  %v343_v62 = vunpack.c.h.bf16 %v2023_v15  ;;  %v358_v4 = vmax.f32 %v148_v39, 0.0  ;;  %v373_v48 = vmax.f32 %v163_v5, 0.0  ;;  %1467 = vmatpush.msra.mxu2 %v1121_v42  ;;  %v1087_v41 = vld [vmem:[#allocation2 + $0x428] sm:$0xff]  ;;  %v2088_v39 = vld [vmem:[%s2451_s0 + $0x5c] sm:$0xff]  ;;  %v2100_v38 = vld [vmem:[%s2451_s0 + $0xd4] sm:$0xff] }
  0x91   :  { %v1233_v20 = vsel %vm1228_vm1, %v823_v63, %v628_v7  ;;  %v856_v28 = vadd.f32 %v855_v37, %v854_v50  ;;  %v298_v16 = vunpack.c.h.bf16 %v2018_v14  ;;  %v313_v56 = vunpack.c.h.bf16 %v2030_v55  ;;  %v1137_v14 = vld [vmem:[#allocation2 + $0x5b8] sm:$0xff]  ;;  %v1104_v55 = vld [vmem:[#allocation2 + $0x4b0] sm:$0xff]  ;;  %1486 = vmatpush.msra.mxu3 %v1138_v44  ;;  %v1119_v37 = vld [vmem:[#allocation2 + $0x528] sm:$0xff]  ;;  %1428 = vmatpush.msra.mxu0 %v1088_v11 }
  0x92   :  { %1355 = vmatmul.f32.vlgmr.msrb.gmra.mxu0 %v1233_v20  ;;  %v662_v15 = vrot.slane %v661_v60, 4  ;;  %v388_v9 = vmax.f32 %v178_v40, 0.0  ;;  %v463_v33 = vmax.f32 %v253_v35, 0.0  ;;  %v478_v59 = vmax.f32 %v268_v58, 0.0  ;;  %1468 = vmatpush.msra.mxu2 %v1120_v25  ;;  %v1136_v40 = vld [vmem:[#allocation2 + $0x5b0] sm:$0xff]  ;;  %v2118_v26 = vld [vmem:[%s2451_s0 + $0x1c4] sm:$0xff] }
  0x93   :  { %v857_v19 = vrot.slane %v856_v28, 4  ;;  %v328_v61 = vunpack.c.h.bf16 %v2472_v29  ;;  %v448_v2 = vmax.f32 %v238_v32, 0.0  ;;  %v493_v52 = vmax.f32 %v283_v36, 0.0  ;;  %1487 = vmatpush.msra.mxu3 %v1137_v14  ;;  %1448 = vmatpush.msra.mxu1 %v1104_v55  ;;  %v2113_v34 = vld [vmem:[%s2451_s0 + $0x14c] sm:$0xff]  ;;  %v1085_v36 = vld [vmem:[#allocation2 + $0x418] sm:$0xff] }
  0x94   :  { %v663_v31 = vadd.f32 %v662_v15, %v661_v60  ;;  %v403_v24 = vmax.f32 %v193_v49, 0.0  ;;  %v553_v53 = vmax.f32 %v343_v62, 0.0  ;;  %v629_v8 = vadd.f32 %v373_v48, %v358_v4  ;;  %v1103_v49 = vld [vmem:[#allocation2 + $0x4a8] sm:$0xff]  ;;  %1429 = vmatpush.msra.mxu0 %v1087_v41  ;;  %1469 = vmatpush.msra.mxu2 %v1119_v37  ;;  %v1117_v54 = vld [vmem:[#allocation2 + $0x518] sm:$0xff]  ;;  %v1084_v44 = vld [vmem:[#allocation2 + $0x410] sm:$0xff] }
  0x95   :  { %v858_v57 = vadd.f32 %v857_v19, %v856_v28  ;;  %v418_v23 = vmax.f32 %v208_v12, 0.0  ;;  %v508_v5 = vmax.f32 %v298_v16, 0.0  ;;  %v824_v17 = vadd.f32 %v478_v59, %v463_v33  ;;  %v1118_v12 = vld [vmem:[#allocation2 + $0x520] sm:$0xff]  ;;  %1488 = vmatpush.msra.mxu3 %v1136_v40  ;;  %1449 = vmatpush.msra.mxu1 %v1103_v49  ;;  %v2129_v10 = vld [vmem:[%s2451_s0 + $0x188] sm:$0x11]  ;;  %v2140_v42 = vld [vmem:[%s2451_s0 + $0x278] sm:$0xff] }
  0x96   :  { %v664_v21 = vrot.slane %v663_v31, 2  ;;  %v433_v18 = vmax.f32 %v223_v1, 0.0  ;;  %v523_v51 = vmax.f32 %v313_v56, 0.0  ;;  %v630_v30 = vadd.f32 %v629_v8, %v388_v9  ;;  %v1102_v1 = vld [vmem:[#allocation2 + $0x4a0] sm:$0xff]  ;;  %1430 = vmatpush.msra.mxu0 %v1086_v6  ;;  %1470 = vmatpush.msra.mxu2 %v1118_v12  ;;  %v1116_v45 = vld [vmem:[#allocation2 + $0x510] sm:$0xff]  ;;  %v1133_v25 = vld [vmem:[#allocation2 + $0x598] sm:$0xff] }
  0x97   :  { %v859_v43 = vrot.slane %v858_v57, 2  ;;  %v538_v32 = vmax.f32 %v328_v61, 0.0  ;;  %v634_v35 = vsel %vm568_vm0, %v448_v2, 0.0  ;;  %v825_v58 = vadd.f32 %v824_v17, %v493_v52  ;;  %v2134_v60 = vld [vmem:[%s2451_s0 + $0x23c] sm:$0xff]  ;;  %1489 = vmatpush.msra.mxu3 %v1135_v0  ;;  %1450 = vmatpush.msra.mxu1 %v1102_v1  ;;  %v2147_v15 = vld [vmem:[%s2451_s0 + $0x2b4] sm:$0xff]  ;;  %v1083_v55 = vld [vmem:[#allocation2 + $0x408] sm:$0xff] }
  0x98   :  { %v665_v7 = vadd.f32 %v664_v21, %v663_v31  ;;  %v631_v63 = vadd.f32 %v630_v30, %v403_v24  ;;  %v829_v50 = vsel %vm568_vm0, %v553_v53, 0.0  ;;  %v151_v62 = vunpack.c.l.bf16 %v2083_v22  ;;  %1431 = vmatpush.msra.mxu0 %v1085_v36  ;;  %1471 = vmatpush.msra.mxu2 %v1117_v54  ;;  %v1100_v19 = vld [vmem:[#allocation2 + $0x490] sm:$0xff]  ;;  %v1115_v31 = vld [vmem:[#allocation2 + $0x508] sm:$0xff]  ;;  %v1082_v49 = vld [vmem:[#allocation2 + $0x400] sm:$0xff] }
  0x99   :  { %v860_v4 = vadd.f32 %v859_v43, %v858_v57  ;;  %v826_v48 = vadd.f32 %v825_v58, %v508_v5  ;;  %v166_v20 = vunpack.c.l.bf16 %v2088_v39  ;;  %v181_v28 = vunpack.c.l.bf16 %v2093_v47  ;;  %v2154_v29 = vld [vmem:[%s2451_s0 + $0x32c] sm:$0x11]  ;;  %1490 = vmatpush.msra.mxu3 %v1134_v13  ;;  %1451 = vmatpush.msra.mxu1 %v1101_v27  ;;  %v1114_v12 = vld [vmem:[#allocation2 + $0x500] sm:$0xff] }
  0x9a   :  { %v666_v16 = vrot.slane %v665_v7, 1  ;;  %v632_v56 = vadd.f32 %v631_v63, %v418_v23  ;;  %v196_v9 = vunpack.c.l.bf16 %v2100_v38  ;;  %v211_v33 = vunpack.c.l.bf16 %v2107_v46  ;;  %v2161_v24 = vld [vmem:[%s2451_s0 + $0x2f0] sm:$0xff]  ;;  %1432 = vmatpush.msra.mxu0 %v1084_v44  ;;  %1472 = vmatpush.msra.mxu2 %v1116_v45  ;;  %v1099_v57 = vld [vmem:[#allocation2 + $0x488] sm:$0xff] }
  0x9b   :  { %v861_v59 = vrot.slane %v860_v4, 1  ;;  %v827_v11 = vadd.f32 %v826_v48, %v523_v51  ;;  %v226_v61 = vunpack.c.l.bf16 %v2113_v34  ;;  %v241_v2 = vunpack.c.l.bf16 %v2129_v10  ;;  %1491 = vmatpush.msra.mxu3 %v1133_v25  ;;  %1452 = vmatpush.msra.mxu1 %v1100_v19  ;;  %v1132_v40 = vld [vmem:[#allocation2 + $0x590] sm:$0xff]  ;;  %v1131_v58 = vld [vmem:[#allocation2 + $0x588] sm:$0xff]  ;;  %v2189_v25 = vld [vmem:[%s2451_s0 + $0xdc] sm:$0xff] }
  0x9c   :  { %v667_v52 = vadd.f32 %v666_v16, %v665_v7  ;;  %v633_v14 = vadd.f32 %v632_v56, %v433_v18  ;;  %v256_v53 = vunpack.c.l.bf16 %v2118_v26  ;;  %v271_v8 = vunpack.c.l.bf16 %v2123_v3  ;;  %1433 = vmatpush.msra.mxu0 %v1083_v55  ;;  %1473 = vmatpush.msra.mxu2 %v1115_v31  ;;  %v2174_v27 = vld [vmem:[%s2451_s0 + $0x28] sm:$0xff] }
  0x9d   :  { %v862_v41 = vadd.f32 %v861_v59, %v860_v4  ;;  %v828_v37 = vadd.f32 %v827_v11, %v538_v32  ;;  %v286_v23 = vunpack.c.l.bf16 %v2134_v60  ;;  %v301_v5 = vunpack.c.l.bf16 %v2140_v42  ;;  %1453 = vmatpush.msra.mxu1 %v1099_v57  ;;  %1492 = vmatpush.msra.mxu3 %v1132_v40  ;;  %v2179_v44 = vld [vmem:[%s2451_s0 + $0x64] sm:$0xff] }
  0x9e   :  { %v635_v17 = vadd.f32 %v634_v35, %v633_v14  ;;  %v346_v21 = vunpack.c.l.bf16 %v2154_v29  ;;  %v361_v18 = vmax.f32 %v151_v62, 0.0  ;;  %v376_v51 = vmax.f32 %v166_v20, 0.0  ;;  %1434 = vmatpush.msra.mxu0 %v1082_v49  ;;  %1474 = vmatpush.msra.mxu2 %v1114_v12  ;;  %v2184_v11 = vld [vmem:[%s2451_s0 + $0xa0] sm:$0xff]  ;;  %v2200_v14 = vld [vmem:[%s2451_s0 + $0x154] sm:$0xff] }
  0x9f   :  { %v1236_v30 = vsel %vm1228_vm1, %v862_v41, %v667_v52  ;;  %v830_v6 = vadd.f32 %v829_v50, %v828_v37  ;;  %v316_v43 = vunpack.c.l.bf16 %v2147_v15  ;;  %v331_v32 = vunpack.c.l.bf16 %v2161_v24  ;;  %1493 = vmatpush.msra.mxu3 %v1131_v58  ;;  %v2195_v52 = vld [vmem:[%s2451_s0 + $0x118] sm:$0xff]  ;;  %v2207_v41 = vld [vmem:[%s2451_s0 + $0x190] sm:$0x11]  ;;  %v2223_v40 = vld [vmem:[%s2451_s0 + $0x244] sm:$0xff] }
  0xa0   :  { %1415 = vmatmul.f32.vlgmr.msrb.gmra.mxu3 %v1236_v30  ;;  %v636_v35 = vrot.slane %v635_v17, 4  ;;  %v391_v0 = vmax.f32 %v181_v28, 0.0  ;;  %v466_v1 = vmax.f32 %v256_v53, 0.0  ;;  %v481_v7 = vmax.f32 %v271_v8, 0.0  ;;  %v2212_v37 = vld [vmem:[%s2451_s0 + $0x1cc] sm:$0xff]  ;;  %v2228_v49 = vld [vmem:[%s2451_s0 + $0x280] sm:$0xff] }
  0xa1   :  { %v831_v63 = vrot.slane %v830_v6, 4  ;;  %v406_v36 = vmax.f32 %v196_v9, 0.0  ;;  %v451_v54 = vmax.f32 %v241_v2, 0.0  ;;  %v496_v50 = vmax.f32 %v286_v23, 0.0 }
  0xa2   :  { %v637_v62 = vadd.f32 %v636_v35, %v635_v17  ;;  %v421_v4 = vmax.f32 %v211_v33, 0.0  ;;  %v556_v48 = vmax.f32 %v346_v21, 0.0  ;;  %v668_v13 = vadd.f32 %v376_v51, %v361_v18  ;;  %v2218_v17 = vld [vmem:[%s2451_s0 + $0x208] sm:$0xff]  ;;  %v1193_v35 = vld [vmem:[#allocation2 + $0x778] sm:$0xff] }
  0xa3   :  { %v832_v20 = vadd.f32 %v831_v63, %v830_v6  ;;  %v436_v28 = vmax.f32 %v226_v61, 0.0  ;;  %v511_v16 = vmax.f32 %v301_v5, 0.0  ;;  %v863_v56 = vadd.f32 %v481_v7, %v466_v1  ;;  %v2235_v6 = vld [vmem:[%s2451_s0 + $0x334] sm:$0x11]  ;;  %v2242_v1 = vld [vmem:[%s2451_s0 + $0x2bc] sm:$0xff]  ;;  %1539 = vmatpush.msrb.mxu2 %v1193_v35 }
  0xa4   :  { %v638_v45 = vrot.slane %v637_v62, 2  ;;  %v526_v9 = vmax.f32 %v316_v43, 0.0  ;;  %v541_v33 = vmax.f32 %v331_v32, 0.0  ;;  %v669_v59 = vadd.f32 %v668_v13, %v391_v0  ;;  %v1161_v32 = vld [vmem:[#allocation2 + $0x678] sm:$0xff] }
  0xa5   :  { %v833_v19 = vrot.slane %v832_v20, 2  ;;  %v673_v61 = vsel %vm568_vm0, %v451_v54, 0.0  ;;  %v864_v2 = vadd.f32 %v863_v56, %v496_v50  ;;  %v153_v55 = vunpack.c.l.bf16 %v2174_v27  ;;  %1499 = vmatpush.msrb.mxu0 %v1161_v32  ;;  %v1130_v54 = vld [vmem:[#allocation2 + $0x580] sm:$0xff] }
  0xa6   :  { %v639_v31 = vadd.f32 %v638_v45, %v637_v62  ;;  %v670_v53 = vadd.f32 %v669_v59, %v406_v36  ;;  %v868_v8 = vsel %vm568_vm0, %v556_v48, 0.0  ;;  %v168_v57 = vunpack.c.l.bf16 %v2179_v44  ;;  %v1098_v36 = vld [vmem:[#allocation2 + $0x480] sm:$0xff]  ;;  %1494 = vmatpush.msra.mxu3 %v1130_v54 }
  0xa7   :  { %v834_v23 = vadd.f32 %v833_v19, %v832_v20  ;;  %v865_v5 = vadd.f32 %v864_v2, %v511_v16  ;;  %v183_v21 = vunpack.c.l.bf16 %v2184_v11  ;;  %v198_v18 = vunpack.c.l.bf16 %v2189_v25  ;;  %1454 = vmatpush.msra.mxu1 %v1098_v36 }
  0xa8   :  { %v640_v51 = vrot.slane %v639_v31, 1  ;;  %v671_v30 = vadd.f32 %v670_v53, %v421_v4  ;;  %v213_v12 = vunpack.c.l.bf16 %v2195_v52  ;;  %v228_v43 = vunpack.c.l.bf16 %v2200_v14  ;;  %v2249_v4 = vld [vmem:[%s2451_s0 + $0x2f8] sm:$0xff] }
  0xa9   :  { %v835_v58 = vrot.slane %v834_v23, 1  ;;  %v866_v0 = vadd.f32 %v865_v5, %v526_v9  ;;  %v243_v7 = vunpack.c.l.bf16 %v2207_v41  ;;  %v258_v63 = vunpack.c.l.bf16 %v2212_v37  ;;  %2473 = vst [vmem:[#allocation9_spill] sm:$0xff] %v2249_v4 }
  0xaa   :  { %v641_v50 = vadd.f32 %v640_v51, %v639_v31  ;;  %v672_v62 = vadd.f32 %v671_v30, %v436_v28  ;;  %v273_v48 = vunpack.c.l.bf16 %v2218_v17  ;;  %v288_v13 = vunpack.c.l.bf16 %v2223_v40 }
  0xab   :  { %v836_v20 = vadd.f32 %v835_v58, %v834_v23  ;;  %v867_v16 = vadd.f32 %v866_v0, %v541_v33  ;;  %v303_v56 = vunpack.c.l.bf16 %v2228_v49  ;;  %v348_v45 = vunpack.c.l.bf16 %v2235_v6 }
  0xac   :  { %v674_v9 = vadd.f32 %v673_v61, %v672_v62  ;;  %v318_v28 = vunpack.c.l.bf16 %v2242_v1  ;;  %v363_v59 = vmax.f32 %v153_v55, 0.0  ;;  %v378_v19 = vmax.f32 %v168_v57, 0.0 }
  0xad   :  { %v1234_v2 = vsel %vm1228_vm1, %v836_v20, %v641_v50  ;;  %v869_v31 = vadd.f32 %v868_v8, %v867_v16  ;;  %v333_v53 = vunpack.c.l.bf16 %v2249_v4  ;;  %v468_v5 = vmax.f32 %v258_v63, 0.0 }
  0xae   :  { %1375 = vmatmul.f32.vlgmr.msrb.gmra.mxu1 %v1234_v2  ;;  %v675_v51 = vrot.slane %v674_v9, 4  ;;  %v393_v30 = vmax.f32 %v183_v21, 0.0  ;;  %v483_v23 = vmax.f32 %v273_v48, 0.0  ;;  %v498_v33 = vmax.f32 %v288_v13, 0.0 }
  0xaf   :  { %v870_v32 = vrot.slane %v869_v31, 4  ;;  %v408_v35 = vmax.f32 %v198_v18, 0.0  ;;  %v453_v58 = vmax.f32 %v243_v7, 0.0  ;;  %v558_v0 = vmax.f32 %v348_v45, 0.0 }
  0xb0   :  { %v676_v61 = vadd.f32 %v675_v51, %v674_v9  ;;  %v513_v36 = vmax.f32 %v303_v56, 0.0  ;;  %v694_v54 = vadd.f32 %v378_v19, %v363_v59  ;;  %v889_v55 = vadd.f32 %v483_v23, %v468_v5 }
  0xb1   :  { %v871_v57 = vadd.f32 %v870_v32, %v869_v31  ;;  %v423_v62 = vmax.f32 %v213_v12, 0.0  ;;  %v438_v50 = vmax.f32 %v228_v43, 0.0  ;;  %v528_v20 = vmax.f32 %v318_v28, 0.0 }
  0xb2   :  { %v677_v8 = vrot.slane %v676_v61, 2  ;;  %v695_v16 = vadd.f32 %v694_v54, %v393_v30  ;;  %v890_v63 = vadd.f32 %v889_v55, %v498_v33  ;;  %v543_v4 = vmax.f32 %v333_v53, 0.0 }
  0xb3   :  { %v872_v2 = vrot.slane %v871_v57, 2  ;;  %v699_v21 = vsel %vm568_vm0, %v453_v58, 0.0  ;;  %v894_v48 = vsel %vm568_vm0, %v558_v0, 0.0  ;;  %v152_v56 = vunpack.c.h.bf16 %v2083_v22 }
  0xb4   :  { %v678_v18 = vadd.f32 %v677_v8, %v676_v61  ;;  %v696_v7 = vadd.f32 %v695_v16, %v408_v35  ;;  %v891_v13 = vadd.f32 %v890_v63, %v513_v36  ;;  %v167_v9 = vunpack.c.h.bf16 %v2088_v39 }
  0xb5   :  { %v873_v45 = vadd.f32 %v872_v2, %v871_v57  ;;  %v182_v12 = vunpack.c.h.bf16 %v2093_v47  ;;  %v197_v43 = vunpack.c.h.bf16 %v2100_v38  ;;  %v212_v31 = vunpack.c.h.bf16 %v2107_v46 }
  0xb6   :  { %v679_v28 = vrot.slane %v678_v18, 1  ;;  %v697_v59 = vadd.f32 %v696_v7, %v423_v62  ;;  %v892_v19 = vadd.f32 %v891_v13, %v528_v20  ;;  %v227_v5 = vunpack.c.h.bf16 %v2113_v34 }
  0xb7   :  { %v874_v53 = vrot.slane %v873_v45, 1  ;;  %v257_v51 = vunpack.c.h.bf16 %v2118_v26  ;;  %v272_v30 = vunpack.c.h.bf16 %v2123_v3  ;;  %v287_v39 = vunpack.c.h.bf16 %v2134_v60 }
  0xb8   :  { %v680_v22 = vadd.f32 %v679_v28, %v678_v18  ;;  %v698_v23 = vadd.f32 %v697_v59, %v438_v50  ;;  %v893_v33 = vadd.f32 %v892_v19, %v543_v4  ;;  %v242_v38 = vunpack.c.h.bf16 %v2129_v10 }
  0xb9   :  { %v875_v47 = vadd.f32 %v874_v53, %v873_v45  ;;  %v362_v32 = vmax.f32 %v152_v56, 0.0  ;;  %v377_v35 = vmax.f32 %v167_v9, 0.0  ;;  %v302_v46 = vunpack.c.h.bf16 %v2140_v42 }
  0xba   :  { %v700_v58 = vadd.f32 %v699_v21, %v698_v23  ;;  %v895_v0 = vadd.f32 %v894_v48, %v893_v33  ;;  %v347_v34 = vunpack.c.h.bf16 %v2154_v29  ;;  %v392_v61 = vmax.f32 %v182_v12, 0.0  ;;  %v1192_v23 = vld [vmem:[#allocation2 + $0x770] sm:$0xff] }
  0xbb   :  { %v1237_v26 = vsel %vm1228_vm1, %v875_v47, %v680_v22  ;;  %v467_v3 = vmax.f32 %v257_v51, 0.0  ;;  %v482_v36 = vmax.f32 %v272_v30, 0.0  ;;  %v317_v60 = vunpack.c.h.bf16 %v2147_v15  ;;  %v1177_v22 = vld [vmem:[#allocation2 + $0x6f8] sm:$0xff]  ;;  %1540 = vmatpush.msrb.mxu2 %v1192_v23 }
  0xbc   :  { %1435 = vmatmul.f32.vlgmr.msra.gmra.mxu0 %v1237_v26  ;;  %v701_v4 = vrot.slane %v700_v58, 4  ;;  %v896_v54 = vrot.slane %v895_v0, 4  ;;  %v497_v55 = vmax.f32 %v287_v39, 0.0  ;;  %v332_v10 = vunpack.c.h.bf16 %v2161_v24  ;;  %1519 = vmatpush.msrb.mxu1 %v1177_v22 }
  0xbd   :  { %v407_v57 = vmax.f32 %v197_v43, 0.0  ;;  %v452_v62 = vmax.f32 %v242_v38, 0.0  ;;  %v681_v50 = vadd.f32 %v377_v35, %v362_v32  ;;  %v512_v20 = vmax.f32 %v302_v46, 0.0  ;;  %v1176_v32 = vld [vmem:[#allocation2 + $0x6f0] sm:$0xff]  ;;  %v1158_v46 = vld [vmem:[#allocation2 + $0x660] sm:$0xff] }
  0xbe   :  { %v702_v8 = vadd.f32 %v701_v4, %v700_v58  ;;  %v897_v42 = vadd.f32 %v896_v54, %v895_v0  ;;  %v876_v29 = vadd.f32 %v482_v36, %v467_v3  ;;  %v422_v16 = vmax.f32 %v212_v31, 0.0  ;;  %1520 = vmatpush.msrb.mxu1 %v1176_v32  ;;  %v1185_v32 = vld [vmem:[#allocation2 + $0x738] sm:$0xff] }
  0xbf   :  { %v557_v63 = vmax.f32 %v347_v34, 0.0  ;;  %v682_v2 = vadd.f32 %v681_v50, %v392_v61  ;;  %v527_v18 = vmax.f32 %v317_v60, 0.0  ;;  %v437_v13 = vmax.f32 %v227_v5, 0.0  ;;  %v1160_v5 = vld [vmem:[#allocation2 + $0x670] sm:$0xff] }
  0xc0   :  { %v703_v21 = vrot.slane %v702_v8, 2  ;;  %v898_v48 = vrot.slane %v897_v42, 2  ;;  %v877_v7 = vadd.f32 %v876_v29, %v497_v55  ;;  %v542_v56 = vmax.f32 %v332_v10, 0.0  ;;  %1500 = vmatpush.msrb.mxu0 %v1160_v5  ;;  %v1186_v5 = vld [vmem:[#allocation2 + $0x740] sm:$0xff] }
  0xc1   :  { %v683_v15 = vadd.f32 %v682_v2, %v407_v57  ;;  %v686_v24 = vsel %vm568_vm0, %v452_v62, 0.0  ;;  %v881_v28 = vsel %vm568_vm0, %v557_v63, 0.0  ;;  %v154_v59 = vunpack.c.h.bf16 %v2174_v27  ;;  %v1159_v27 = vld [vmem:[#allocation2 + $0x668] sm:$0xff]  ;;  %v1174_v57 = vld [vmem:[#allocation2 + $0x6e0] sm:$0xff]  ;;  %v1189_v62 = vld [vmem:[#allocation2 + $0x758] sm:$0xff] }
  0xc2   :  { %v704_v45 = vadd.f32 %v703_v21, %v702_v8  ;;  %v899_v9 = vadd.f32 %v898_v48, %v897_v42  ;;  %v878_v12 = vadd.f32 %v877_v7, %v512_v20  ;;  %v169_v19 = vunpack.c.h.bf16 %v2179_v44  ;;  %v1191_v44 = vld [vmem:[#allocation2 + $0x768] sm:$0xff]  ;;  %1501 = vmatpush.msrb.mxu0 %v1159_v27  ;;  %v1173_v2 = vld [vmem:[#allocation2 + $0x6d8] sm:$0xff]  ;;  %v1188_v21 = vld [vmem:[#allocation2 + $0x750] sm:$0xff] }
  0xc3   :  { %v684_v43 = vadd.f32 %v683_v15, %v422_v16  ;;  %v184_v30 = vunpack.c.h.bf16 %v2184_v11  ;;  %v199_v39 = vunpack.c.h.bf16 %v2189_v25  ;;  %v259_v47 = vunpack.c.h.bf16 %v2212_v37  ;;  %v1175_v37 = vld [vmem:[#allocation2 + $0x6e8] sm:$0xff]  ;;  %1541 = vmatpush.msrb.mxu2 %v1191_v44  ;;  %v1170_v27 = vld [vmem:[#allocation2 + $0x6c0] sm:$0xff] }
  0xc4   :  { %v705_v31 = vrot.slane %v704_v45, 1  ;;  %v900_v53 = vrot.slane %v899_v9, 1  ;;  %v879_v51 = vadd.f32 %v878_v12, %v527_v18  ;;  %v274_v38 = vunpack.c.h.bf16 %v2218_v17  ;;  %v1190_v17 = vld [vmem:[#allocation2 + $0x760] sm:$0xff]  ;;  %1502 = vmatpush.msrb.mxu0 %v1158_v46  ;;  %1521 = vmatpush.msrb.mxu1 %v1175_v37  ;;  %v2474_v18 = vld [vmem:[#allocation9_spill] sm:$0xff] }
  0xc5   :  { %v685_v33 = vadd.f32 %v684_v43, %v437_v13  ;;  %v289_v11 = vunpack.c.h.bf16 %v2223_v40  ;;  %v214_v26 = vunpack.c.h.bf16 %v2195_v52  ;;  %v364_v25 = vmax.f32 %v154_v59, 0.0  ;;  %v1157_v40 = vld [vmem:[#allocation2 + $0x658] sm:$0xff]  ;;  %1542 = vmatpush.msrb.mxu2 %v1190_v17  ;;  %v1154_v59 = vld [vmem:[#allocation2 + $0x640] sm:$0xff]  ;;  %v1184_v46 = vld [vmem:[#allocation2 + $0x730] sm:$0xff] }
  0xc6   :  { %v706_v35 = vadd.f32 %v705_v31, %v704_v45  ;;  %v901_v58 = vadd.f32 %v900_v53, %v899_v9  ;;  %v880_v0 = vadd.f32 %v879_v51, %v542_v56  ;;  %v379_v61 = vmax.f32 %v169_v19, 0.0  ;;  %1503 = vmatpush.msrb.mxu0 %v1157_v40  ;;  %1522 = vmatpush.msrb.mxu1 %v1174_v57  ;;  %v1172_v9 = vld [vmem:[#allocation2 + $0x6d0] sm:$0xff] }
  0xc7   :  { %v687_v34 = vadd.f32 %v686_v24, %v685_v33  ;;  %v229_v4 = vunpack.c.h.bf16 %v2200_v14  ;;  %v304_v54 = vunpack.c.h.bf16 %v2228_v49  ;;  %v394_v55 = vmax.f32 %v184_v30, 0.0  ;;  %v1156_v14 = vld [vmem:[#allocation2 + $0x650] sm:$0xff]  ;;  %1543 = vmatpush.msrb.mxu2 %v1189_v62  ;;  %v1187_v24 = vld [vmem:[#allocation2 + $0x748] sm:$0xff] }
  0xc8   :  { %v1239_v3 = vsel %vm1228_vm1, %v901_v58, %v706_v35  ;;  %v882_v36 = vadd.f32 %v881_v28, %v880_v0  ;;  %v469_v10 = vmax.f32 %v259_v47, 0.0  ;;  %v484_v52 = vmax.f32 %v274_v38, 0.0  ;;  %1504 = vmatpush.msrb.mxu0 %v1156_v14  ;;  %1523 = vmatpush.msrb.mxu1 %v1173_v2  ;;  %v1171_v30 = vld [vmem:[#allocation2 + $0x6c8] sm:$0xff]  ;;  %v1152_v0 = vld [vmem:[#allocation2 + $0x630] sm:$0xff] }
  0xc9   :  { %1475 = vmatmul.f32.vlgmr.msra.gmra.mxu2 %v1239_v3  ;;  %v688_v60 = vrot.slane %v687_v34, 4  ;;  %v244_v8 = vunpack.c.h.bf16 %v2207_v41  ;;  %v319_v42 = vunpack.c.h.bf16 %v2242_v1  ;;  %v499_v20 = vmax.f32 %v289_v11, 0.0  ;;  %v1155_v41 = vld [vmem:[#allocation2 + $0x648] sm:$0xff]  ;;  %v1169_v11 = vld [vmem:[#allocation2 + $0x6b8] sm:$0xff]  ;;  %v1168_v37 = vld [vmem:[#allocation2 + $0x6b0] sm:$0xff] }
  0xca   :  { %v883_v50 = vrot.slane %v882_v36, 4  ;;  %v349_v29 = vunpack.c.h.bf16 %v2235_v6  ;;  %v409_v16 = vmax.f32 %v199_v39, 0.0  ;;  %v707_v63 = vadd.f32 %v379_v61, %v364_v25  ;;  %1544 = vmatpush.msrb.mxu2 %v1188_v21  ;;  %1505 = vmatpush.msrb.mxu0 %v1155_v41  ;;  %v1153_v39 = vld [vmem:[#allocation2 + $0x638] sm:$0xff]  ;;  %v1151_v61 = vld [vmem:[#allocation2 + $0x628] sm:$0xff]  ;;  %v2297_v17 = vld [vmem:[%s2451_s0 + $0x30] sm:$0xff] }
  0xcb   :  { %v689_v49 = vadd.f32 %v688_v60, %v687_v34  ;;  %v334_v7 = vunpack.c.h.bf16 %v2474_v18  ;;  %v514_v13 = vmax.f32 %v304_v54, 0.0  ;;  %v902_v56 = vadd.f32 %v484_v52, %v469_v10  ;;  %1524 = vmatpush.msrb.mxu1 %v1172_v9  ;;  %v1150_v54 = vld [vmem:[#allocation2 + $0x620] sm:$0xff]  ;;  %v2302_v40 = vld [vmem:[%s2451_s0 + $0x6c] sm:$0xff] }
  0xcc   :  { %v884_v48 = vadd.f32 %v883_v50, %v882_v36  ;;  %v424_v15 = vmax.f32 %v214_v26, 0.0  ;;  %v708_v45 = vadd.f32 %v707_v63, %v394_v55  ;;  %v454_v12 = vmax.f32 %v244_v8, 0.0  ;;  %1545 = vmatpush.msrb.mxu2 %v1187_v24  ;;  %1506 = vmatpush.msrb.mxu0 %v1154_v59  ;;  %v1167_v55 = vld [vmem:[#allocation2 + $0x6a8] sm:$0xff]  ;;  %v2318_v50 = vld [vmem:[%s2451_s0 + $0x1d4] sm:$0xff]  ;;  %v2335_v63 = vld [vmem:[%s2451_s0 + $0x120] sm:$0xff] }
  0xcd   :  { %v690_v1 = vrot.slane %v689_v49, 2  ;;  %v529_v43 = vmax.f32 %v319_v42, 0.0  ;;  %v903_v28 = vadd.f32 %v902_v56, %v499_v20  ;;  %v439_v31 = vmax.f32 %v229_v4, 0.0  ;;  %1525 = vmatpush.msrb.mxu1 %v1171_v30  ;;  %v1183_v4 = vld [vmem:[#allocation2 + $0x728] sm:$0xff]  ;;  %v2323_v8 = vld [vmem:[%s2451_s0 + $0x210] sm:$0xff]  ;;  %v2340_v21 = vld [vmem:[%s2451_s0 + $0x15c] sm:$0xff] }
  0xce   :  { %v885_v6 = vrot.slane %v884_v48, 2  ;;  %v559_v53 = vmax.f32 %v349_v29, 0.0  ;;  %v709_v51 = vadd.f32 %v708_v45, %v409_v16  ;;  %v544_v23 = vmax.f32 %v334_v7, 0.0  ;;  %1546 = vmatpush.msrb.mxu2 %v1186_v5  ;;  %1507 = vmatpush.msrb.mxu0 %v1153_v39  ;;  %v2307_v10 = vld [vmem:[%s2451_s0 + $0xa8] sm:$0xff]  ;;  %v1182_v29 = vld [vmem:[#allocation2 + $0x720] sm:$0xff]  ;;  %v1149_v16 = vld [vmem:[#allocation2 + $0x618] sm:$0xff] }
  0xcf   :  { %v691_v19 = vadd.f32 %v690_v1, %v689_v49  ;;  %v904_v33 = vadd.f32 %v903_v28, %v514_v13  ;;  %v712_v35 = vsel %vm568_vm0, %v454_v12, 0.0  ;;  %1526 = vmatpush.msrb.mxu1 %v1170_v27  ;;  %v2312_v52 = vld [vmem:[%s2451_s0 + $0xe4] sm:$0xff]  ;;  %v2328_v42 = vld [vmem:[%s2451_s0 + $0x24c] sm:$0xff]  ;;  %v155_v20 = vunpack.c.l.bf16 %v2297_v17 }
  0xd0   :  { %v886_v22 = vadd.f32 %v885_v6, %v884_v48  ;;  %v710_v38 = vadd.f32 %v709_v51, %v424_v15  ;;  %v907_v25 = vsel %vm568_vm0, %v559_v53, 0.0  ;;  %1547 = vmatpush.msrb.mxu2 %v1185_v32  ;;  %1508 = vmatpush.msrb.mxu0 %v1152_v0  ;;  %v170_v14 = vunpack.c.l.bf16 %v2302_v40  ;;  %v2345_v48 = vld [vmem:[%s2451_s0 + $0x198] sm:$0x11]  ;;  %v2350_v18 = vld [vmem:[%s2451_s0 + $0x288] sm:$0xff]  ;;  %v1166_v1 = vld [vmem:[#allocation2 + $0x6a0] sm:$0xff] }
  0xd1   :  { %v692_v47 = vrot.slane %v691_v19, 1  ;;  %v905_v58 = vadd.f32 %v904_v33, %v529_v43  ;;  %1527 = vmatpush.msrb.mxu1 %v1169_v11  ;;  %v185_v7 = vunpack.c.l.bf16 %v2307_v10  ;;  %v260_v13 = vunpack.c.l.bf16 %v2318_v50  ;;  %v1181_v15 = vld [vmem:[#allocation2 + $0x718] sm:$0xff]  ;;  %v1148_v6 = vld [vmem:[#allocation2 + $0x610] sm:$0xff]  ;;  %v2360_v12 = vld [vmem:[%s2451_s0 + $0x2c4] sm:$0xff] }
  0xd2   :  { %v887_v44 = vrot.slane %v886_v22, 1  ;;  %v711_v26 = vadd.f32 %v710_v38, %v439_v31  ;;  %1548 = vmatpush.msrb.mxu2 %v1184_v46  ;;  %1509 = vmatpush.msrb.mxu0 %v1151_v61  ;;  %v275_v56 = vunpack.c.l.bf16 %v2323_v8  ;;  %v200_v45 = vunpack.c.l.bf16 %v2312_v52  ;;  %v2365_v43 = vld [vmem:[%s2451_s0 + $0x33c] sm:$0x11]  ;;  %v1180_v51 = vld [vmem:[#allocation2 + $0x710] sm:$0xff]  ;;  %v1147_v39 = vld [vmem:[#allocation2 + $0x608] sm:$0xff] }
  0xd3   :  { %v693_v34 = vadd.f32 %v692_v47, %v691_v19  ;;  %v906_v36 = vadd.f32 %v905_v58, %v544_v23  ;;  %1528 = vmatpush.msrb.mxu1 %v1168_v37  ;;  %v290_v9 = vunpack.c.l.bf16 %v2328_v42  ;;  %v215_v28 = vunpack.c.l.bf16 %v2335_v63  ;;  %v1165_v53 = vld [vmem:[#allocation2 + $0x698] sm:$0xff]  ;;  %v2371_v30 = vld [vmem:[%s2451_s0 + $0x300] sm:$0xff] }
  0xd4   :  { %v888_v3 = vadd.f32 %v887_v44, %v886_v22  ;;  %v713_v60 = vadd.f32 %v712_v35, %v711_v26  ;;  %1549 = vmatpush.msrb.mxu2 %v1183_v4  ;;  %1510 = vmatpush.msrb.mxu0 %v1150_v54  ;;  %v365_v59 = vmax.f32 %v155_v20, 0.0  ;;  %v380_v19 = vmax.f32 %v170_v14, 0.0  ;;  %v1164_v44 = vld [vmem:[#allocation2 + $0x690] sm:$0xff]  ;;  %v1179_v35 = vld [vmem:[#allocation2 + $0x708] sm:$0xff]  ;;  %v1178_v4 = vld [vmem:[#allocation2 + $0x700] sm:$0xff] }
  0xd5   :  { %v908_v62 = vadd.f32 %v907_v25, %v906_v36  ;;  %1529 = vmatpush.msrb.mxu1 %v1167_v55  ;;  %v230_v5 = vunpack.c.l.bf16 %v2340_v21  ;;  %v245_v22 = vunpack.c.l.bf16 %v2345_v48  ;;  %v305_v23 = vunpack.c.l.bf16 %v2350_v18  ;;  %v1163_v26 = vld [vmem:[#allocation2 + $0x688] sm:$0xff] }
  0xd6   :  { %v1238_v57 = vsel %vm1228_vm1, %v888_v3, %v693_v34  ;;  %v714_v49 = vrot.slane %v713_v60, 4  ;;  %1550 = vmatpush.msrb.mxu2 %v1182_v29  ;;  %1511 = vmatpush.msrb.mxu0 %v1149_v16  ;;  %v395_v47 = vmax.f32 %v185_v7, 0.0  ;;  %v470_v38 = vmax.f32 %v260_v13, 0.0  ;;  %v1146_v34 = vld [vmem:[#allocation2 + $0x600] sm:$0xff]  ;;  %v38_v3 = vld [vmem:[%s2451_s0 + $0x38] sm:$0xf] }
  0xd7   :  { %1455 = vmatmul.f32.vlgmr.msra.gmra.mxu1 %v1238_v57  ;;  %v909_v2 = vrot.slane %v908_v62, 4  ;;  %v485_v27 = vmax.f32 %v275_v56, 0.0  ;;  %v320_v58 = vunpack.c.l.bf16 %v2360_v12  ;;  %v350_v0 = vunpack.c.l.bf16 %v2365_v43  ;;  %v46_v57 = vld [vmem:[%s2451_s0 + $0x74] sm:$0xf]  ;;  %v54_v29 = vld [vmem:[%s2451_s0 + $0xb0] sm:$0xf] }
  0xd8   :  { %v715_v41 = vadd.f32 %v714_v49, %v713_v60  ;;  %1530 = vmatpush.msrb.mxu1 %v1166_v1  ;;  %1551 = vmatpush.msrb.mxu2 %v1181_v15  ;;  %v500_v11 = vmax.f32 %v290_v9, 0.0  ;;  %v335_v25 = vunpack.c.l.bf16 %v2371_v30  ;;  %v410_v61 = vmax.f32 %v200_v45, 0.0  ;;  %v94_v56 = vld [vmem:[%s2451_s0 + $0x1dc] sm:$0xf]  ;;  %v62_v45 = vld [vmem:[%s2451_s0 + $0xec] sm:$0xf] }
  0xd9   :  { %v910_v24 = vadd.f32 %v909_v2, %v908_v62  ;;  %1512 = vmatpush.msrb.mxu0 %v1148_v6  ;;  %v720_v37 = vadd.f32 %v380_v19, %v365_v59  ;;  %v455_v54 = vmax.f32 %v245_v22, 0.0  ;;  %v515_v60 = vmax.f32 %v305_v23, 0.0  ;;  %v110_v9 = vld [vmem:[%s2451_s0 + $0x254] sm:$0xf]  ;;  %v118_v23 = vld [vmem:[%s2451_s0 + $0x290] sm:$0xf] }
  0xda   :  { %v716_v31 = vrot.slane %v715_v41, 2  ;;  %1531 = vmatpush.msrb.mxu1 %v1165_v53  ;;  %1552 = vmatpush.msrb.mxu2 %v1180_v51  ;;  %v915_v55 = vadd.f32 %v485_v27, %v470_v38  ;;  %v425_v20 = vmax.f32 %v215_v28, 0.0  ;;  %v440_v14 = vmax.f32 %v230_v5, 0.0  ;;  %v86_v53 = vld [vmem:[%s2451_s0 + $0x1a0] sm:$0x1] }
  0xdb   :  { %v911_v33 = vrot.slane %v910_v24, 2  ;;  %1513 = vmatpush.msrb.mxu0 %v1147_v39  ;;  %v721_v49 = vadd.f32 %v720_v37, %v395_v47  ;;  %v530_v2 = vmax.f32 %v320_v58, 0.0  ;;  %v560_v7 = vmax.f32 %v350_v0, 0.0  ;;  %v1162_v38 = vld [vmem:[#allocation2 + $0x680] sm:$0xff] }
  0xdc   :  { %v717_v32 = vadd.f32 %v716_v31, %v715_v41  ;;  %1532 = vmatpush.msrb.mxu1 %v1164_v44  ;;  %1553 = vmatpush.msrb.mxu2 %v1179_v35  ;;  %v916_v13 = vadd.f32 %v915_v55, %v500_v11  ;;  %v102_v41 = vld [vmem:[%s2451_s0 + $0x218] sm:$0xf]  ;;  %v172_v6 = vunpack.c.l.bf16 %v46_v57  ;;  %v545_v28 = vmax.f32 %v335_v25, 0.0  ;;  %v70_v31 = vld [vmem:[%s2451_s0 + $0x128] sm:$0xf] }
  0xdd   :  { %v912_v46 = vadd.f32 %v911_v33, %v910_v24  ;;  %1514 = vmatpush.msrb.mxu0 %v1146_v34  ;;  %v722_v15 = vadd.f32 %v721_v49, %v410_v61  ;;  %v157_v24 = vunpack.c.l.bf16 %v38_v3  ;;  %v725_v59 = vsel %vm568_vm0, %v455_v54, 0.0  ;;  %v142_v33 = vld [vmem:[%s2451_s0 + $0x344] sm:$0x1]  ;;  %v126_v11 = vld [vmem:[%s2451_s0 + $0x2cc] sm:$0xf] }
  0xde   :  { %v718_v36 = vrot.slane %v717_v32, 1  ;;  %1533 = vmatpush.msrb.mxu1 %v1163_v26  ;;  %1554 = vmatpush.msrb.mxu2 %v1178_v4  ;;  %v917_v19 = vadd.f32 %v916_v13, %v515_v60  ;;  %v187_v51 = vunpack.c.l.bf16 %v54_v29  ;;  %v262_v39 = vunpack.c.l.bf16 %v94_v56  ;;  %v78_v0 = vld [vmem:[%s2451_s0 + $0x164] sm:$0xf]  ;;  %v134_v61 = vld [vmem:[%s2451_s0 + $0x308] sm:$0xf] }
  0xdf   :  { %v913_v62 = vrot.slane %v912_v46, 1  ;;  %v723_v22 = vadd.f32 %v722_v15, %v425_v20  ;;  %v277_v47 = vunpack.c.l.bf16 %v102_v41  ;;  %v202_v44 = vunpack.c.l.bf16 %v62_v45 }
  0xe0   :  { %v719_v16 = vadd.f32 %v718_v36, %v717_v32  ;;  %v918_v27 = vadd.f32 %v917_v19, %v530_v2  ;;  %v920_v32 = vsel %vm568_vm0, %v560_v7, 0.0  ;;  %v292_v35 = vunpack.c.l.bf16 %v110_v9  ;;  %1534 = vmatpush.msrb.mxu1 %v1162_v38 }
  0xe1   :  { %v914_v1 = vadd.f32 %v913_v62, %v912_v46  ;;  %v724_v58 = vadd.f32 %v723_v22, %v440_v14  ;;  %v217_v46 = vunpack.c.l.bf16 %v70_v31  ;;  %v367_v34 = vmax.f32 %v157_v24, 0.0 }
  0xe2   :  { %v382_v26 = vmax.f32 %v172_v6, 0.0  ;;  %v919_v25 = vadd.f32 %v918_v27, %v545_v28  ;;  %v247_v37 = vunpack.c.l.bf16 %v86_v53  ;;  %v307_v3 = vunpack.c.l.bf16 %v118_v23 }
  0xe3   :  { %v1240_v5 = vsel %vm1228_vm1, %v914_v1, %v719_v16  ;;  %v352_v36 = vunpack.c.l.bf16 %v142_v33  ;;  %v726_v4 = vadd.f32 %v725_v59, %v724_v58  ;;  %v397_v54 = vmax.f32 %v187_v51, 0.0 }
  0xe4   :  { %1495 = vmatmul.f32.vlgmr.msra.gmra.mxu3 %v1240_v5  ;;  %v472_v60 = vmax.f32 %v262_v39, 0.0  ;;  %v487_v55 = vmax.f32 %v277_v47, 0.0  ;;  %v921_v57 = vadd.f32 %v920_v32, %v919_v25  ;;  %v232_v62 = vunpack.c.l.bf16 %v78_v0 }
  0xe5   :  { %v322_v20 = vunpack.c.l.bf16 %v126_v11  ;;  %v502_v14 = vmax.f32 %v292_v35, 0.0  ;;  %v727_v49 = vrot.slane %v726_v4, 4  ;;  %v337_v29 = vunpack.c.l.bf16 %v134_v61 }
  0xe6   :  { %v412_v16 = vmax.f32 %v202_v44, 0.0  ;;  %v746_v2 = vadd.f32 %v382_v26, %v367_v34  ;;  %v922_v7 = vrot.slane %v921_v57, 4  ;;  %v457_v13 = vmax.f32 %v247_v37, 0.0 }
  0xe7   :  { %v517_v56 = vmax.f32 %v307_v3, 0.0  ;;  %v941_v41 = vadd.f32 %v487_v55, %v472_v60  ;;  %v728_v1 = vadd.f32 %v727_v49, %v726_v4  ;;  %v427_v15 = vmax.f32 %v217_v46, 0.0 }
  0xe8   :  { %v562_v45 = vmax.f32 %v352_v36, 0.0  ;;  %v747_v9 = vadd.f32 %v746_v2, %v397_v54  ;;  %v923_v24 = vadd.f32 %v922_v7, %v921_v57  ;;  %v532_v6 = vmax.f32 %v322_v20, 0.0 }
  0xe9   :  { %v942_v28 = vadd.f32 %v941_v41, %v502_v14  ;;  %v156_v59 = vunpack.c.h.bf16 %v2297_v17  ;;  %v729_v19 = vrot.slane %v728_v1, 2  ;;  %v442_v31 = vmax.f32 %v232_v62, 0.0 }
  0xea   :  { %v547_v53 = vmax.f32 %v337_v29, 0.0  ;;  %v748_v51 = vadd.f32 %v747_v9, %v412_v16  ;;  %v924_v5 = vrot.slane %v923_v24, 2  ;;  %v751_v22 = vsel %vm568_vm0, %v457_v13, 0.0 }
  0xeb   :  { %v943_v23 = vadd.f32 %v942_v28, %v517_v56  ;;  %v171_v33 = vunpack.c.h.bf16 %v2302_v40  ;;  %v730_v39 = vadd.f32 %v729_v19, %v728_v1  ;;  %v946_v38 = vsel %vm568_vm0, %v562_v45, 0.0 }
  0xec   :  { %v749_v47 = vadd.f32 %v748_v51, %v427_v15  ;;  %v186_v27 = vunpack.c.h.bf16 %v2307_v10  ;;  %v925_v32 = vadd.f32 %v924_v5, %v923_v24  ;;  %v201_v17 = vunpack.c.h.bf16 %v2312_v52 }
  0xed   :  { %v944_v44 = vadd.f32 %v943_v23, %v532_v6  ;;  %v261_v35 = vunpack.c.h.bf16 %v2318_v50  ;;  %v731_v58 = vrot.slane %v730_v39, 1  ;;  %v216_v11 = vunpack.c.h.bf16 %v2335_v63 }
  0xee   :  { %v750_v0 = vadd.f32 %v749_v47, %v442_v31  ;;  %v276_v46 = vunpack.c.h.bf16 %v2323_v8  ;;  %v926_v34 = vrot.slane %v925_v32, 1  ;;  %v231_v26 = vunpack.c.h.bf16 %v2340_v21 }
  0xef   :  { %v945_v40 = vadd.f32 %v944_v44, %v547_v53  ;;  %v291_v25 = vunpack.c.h.bf16 %v2328_v42  ;;  %v732_v61 = vadd.f32 %v731_v58, %v730_v39  ;;  %v366_v37 = vmax.f32 %v156_v59, 0.0 }
  0xf0   :  { %v752_v10 = vadd.f32 %v751_v22, %v750_v0  ;;  %v381_v3 = vmax.f32 %v171_v33, 0.0  ;;  %v927_v36 = vadd.f32 %v926_v34, %v925_v32  ;;  %v306_v50 = vunpack.c.h.bf16 %v2350_v18 }
  0xf1   :  { %v947_v52 = vadd.f32 %v946_v38, %v945_v40  ;;  %v471_v4 = vmax.f32 %v261_v35, 0.0  ;;  %v246_v63 = vunpack.c.h.bf16 %v2345_v48  ;;  %v396_v60 = vmax.f32 %v186_v27, 0.0 }
  0xf2   :  { %v753_v54 = vrot.slane %v752_v10, 4  ;;  %v486_v8 = vmax.f32 %v276_v46, 0.0  ;;  %v1241_v55 = vsel %vm1228_vm1, %v927_v36, %v732_v61  ;;  %v321_v21 = vunpack.c.h.bf16 %v2360_v12  ;;  %v1581_v61 = vld [vmem:[%s2453_s2] ss:$0 sm:$0xff]  ;;  %s1637_s2 = smov [#allocation5]  }
  0xf3   :  { %v948_v57 = vrot.slane %v947_v52, 4  ;;  %v501_v42 = vmax.f32 %v291_v25, 0.0  ;;  %1515 = vmatmul.f32.vlgmr.msrb.gmra.mxu0 %v1241_v55  ;;  %v351_v20 = vunpack.c.h.bf16 %v2365_v43  ;;  %v411_v14 = vmax.f32 %v201_v17, 0.0  ;;  %s1565_s19 = sshll.u32 %s1637_s2, 4  ;;  %s1566_s19 = int_to_ptr.vmem [resolvable:$true] %s1565_s19 }
  0xf4   :  { %v754_v62 = vadd.f32 %v753_v54, %v752_v10  ;;  %v733_v49 = vadd.f32 %v381_v3, %v366_v37  ;;  %v336_v18 = vunpack.c.h.bf16 %v2371_v30  ;;  %v516_v16 = vmax.f32 %v306_v50, 0.0  ;;  %v1276_v10 = vpop.f32.mrf.mxu0  ;;  %v1296_v3 = vpop.f32.mrf.mxu1 }
  0xf5   :  { %v949_v29 = vadd.f32 %v948_v57, %v947_v52  ;;  %v928_v2 = vadd.f32 %v486_v8, %v471_v4  ;;  %v426_v7 = vmax.f32 %v216_v11, 0.0  ;;  %v456_v41 = vmax.f32 %v246_v63, 0.0  ;;  %v1316_v52 = vpop.f32.mrf.mxu2 }
  0xf6   :  { %v755_v48 = vrot.slane %v754_v62, 2  ;;  %v734_v13 = vadd.f32 %v733_v49, %v396_v60  ;;  %v531_v1 = vmax.f32 %v321_v21, 0.0  ;;  %v441_v45 = vmax.f32 %v231_v26, 0.0 }
  0xf7   :  { %v950_v56 = vrot.slane %v949_v29, 2  ;;  %v929_v15 = vadd.f32 %v928_v2, %v501_v42  ;;  %v561_v9 = vmax.f32 %v351_v20, 0.0  ;;  %v546_v43 = vmax.f32 %v336_v18, 0.0 }
  0xf8   :  { %v756_v12 = vadd.f32 %v755_v48, %v754_v62  ;;  %v735_v24 = vadd.f32 %v734_v13, %v411_v14  ;;  %v738_v30 = vsel %vm568_vm0, %v456_v41, 0.0  ;;  %v1277_v37 = vadd.f32 %v1581_v61, %v1276_v10 }
  0xf9   :  { %v951_v6 = vadd.f32 %v950_v56, %v949_v29  ;;  %v930_v28 = vadd.f32 %v929_v15, %v516_v16  ;;  %v933_v22 = vsel %vm568_vm0, %v561_v9, 0.0 }
  0xfa   :  { %v757_v59 = vrot.slane %v756_v12, 1  ;;  %v736_v19 = vadd.f32 %v735_v24, %v426_v7  ;;  %v1297_v36 = vadd.f32 %v1296_v3, %v1277_v37  ;;  %v1336_v4 = vpop.f32.mrf.mxu3 }
  0xfb   :  { %v952_v31 = vrot.slane %v951_v6, 1  ;;  %v931_v53 = vadd.f32 %v930_v28, %v531_v1 }
  0xfc   :  { %v758_v51 = vadd.f32 %v757_v59, %v756_v12  ;;  %v737_v5 = vadd.f32 %v736_v19, %v441_v45  ;;  %v1317_v50 = vadd.f32 %v1316_v52, %v1297_v36 }
  0xfd   :  { %v953_v23 = vadd.f32 %v952_v31, %v951_v6  ;;  %v932_v33 = vadd.f32 %v931_v53, %v546_v43 }
  0xfe   :  { %v739_v39 = vadd.f32 %v738_v30, %v737_v5  ;;  %v1337_v54 = vadd.f32 %v1336_v4, %v1317_v50 }
  0xff   :  { %v1243_v47 = vsel %vm1228_vm1, %v953_v23, %v758_v51  ;;  %v934_v38 = vadd.f32 %v933_v22, %v932_v33 }
 0x100   :  { %1555 = vmatmul.f32.vlgmr.msrb.gmra.mxu2 %v1243_v47  ;;  %v740_v27 = vrot.slane %v739_v39, 4 }
 0x101   :  { %v935_v32 = vrot.slane %v934_v38, 4 }
 0x102   :  { %v741_v44 = vadd.f32 %v740_v27, %v739_v39 }
 0x103   :  { %v936_v17 = vadd.f32 %v935_v32, %v934_v38 }
 0x104   :  { %v742_v35 = vrot.slane %v741_v44, 2 }
 0x105   :  { %v937_v58 = vrot.slane %v936_v17, 2 }
 0x106   :  { %v743_v0 = vadd.f32 %v742_v35, %v741_v44 }
 0x107   :  { %v938_v11 = vadd.f32 %v937_v58, %v936_v17 }
 0x108   :  { %v744_v46 = vrot.slane %v743_v0, 1  ;;  %v1396_v57 = vpop.f32.mrf.mxu2 }
 0x109   :  { %v939_v34 = vrot.slane %v938_v11, 1 }
 0x10a   :  { %v745_v40 = vadd.f32 %v744_v46, %v743_v0 }
 0x10b   :  { %v940_v26 = vadd.f32 %v939_v34, %v938_v11 }
 0x10d   :  { %v1242_v25 = vsel %vm1228_vm1, %v940_v26, %v745_v40 }
 0x10e   :  { %1535 = vmatmul.f32.vlgmr.msrb.gmra.mxu1 %v1242_v25 }
 0x10f   :  { %v1356_v63 = vpop.f32.mrf.mxu0 }
 0x110   :  { %v1357_v60 = vadd.f32 %v1356_v63, %v1337_v54 }
 0x123   :  { %v1416_v42 = vpop.f32.mrf.mxu3 }
 0x12b   :  { %v1376_v8 = vpop.f32.mrf.mxu1 }
 0x12c   :  { %v1377_v55 = vadd.f32 %v1376_v8, %v1357_v60 }
 0x12e   :  { %v1397_v21 = vadd.f32 %v1396_v57, %v1377_v55 }
 0x130   :  { %v1417_v20 = vadd.f32 %v1416_v42, %v1397_v21 }
 0x139   :  { %v1436_v62 = vpop.f32.mrf.mxu0 }
 0x13a   :  { %v1437_v14 = vadd.f32 %v1436_v62, %v1417_v20 }
 0x14c   :  { %v1476_v29 = vpop.f32.mrf.mxu2 }
 0x154   :  { %v1456_v49 = vpop.f32.mrf.mxu1 }
 0x155   :  { %v1457_v18 = vadd.f32 %v1456_v49, %v1437_v14 }
 0x157   :  { %v1477_v16 = vadd.f32 %v1476_v29, %v1457_v18 }
 0x167   :  { %v1496_v2 = vpop.f32.mrf.mxu3 }
 0x168   :  { %v1497_v7 = vadd.f32 %v1496_v2, %v1477_v16 }
 0x170   :  { %v1516_v48 = vpop.f32.mrf.mxu0 }
 0x171   :  { %v1517_v13 = vadd.f32 %v1516_v48, %v1497_v7 }
 0x183   :  { %v1556_v41 = vpop.f32.mrf.mxu2 }
 0x18b   :  { %v1536_v56 = vpop.f32.mrf.mxu1 }
 0x18c   :  { %v1537_v1 = vadd.f32 %v1536_v56, %v1517_v13 }
 0x18e   :  { %v1557_v15 = vadd.f32 %v1556_v41, %v1537_v1 }
 0x190   :  { %1559 = vst [vmem:[#allocation5] sm:$0x3] %v1557_v15 }
 0x191   :  { %1570 = dma.vmem_to_hbm [thread:$0]  %s1566_s19, 32, %s1568_s22, [#allocation4]  }
 0x192   :  { %1632 = dma.done.wait [#allocation4], 32  }
 0x193   :  { %1633 = vsyncadd [#allocation4], 4294967264 }
 0x194   :  { %1575 = vsyncpa [#allocation3], 1 }
 0x195   :  { %1576 = vsyncpa [#allocation4], 1 }

</bundles_post_ra>
